<compile_context>
chip_gen: v7x
topology: tpu7x:2x2x1
jax: 0.10.0
libtpu: 0.0.40
codegen_flags: <defaults>
</compile_context>

<pallas_src>
import functools

import jax
import jax.numpy as jnp
from jax.experimental import pallas as pl
from jax.experimental.pallas import tpu as pltpu


# ----------------------------- helpers -----------------------------

def _round_up(x, m):
    return ((x + m - 1) // m) * m


def _pad2d(x, rows, cols):
    r, c = x.shape
    if r == rows and c == cols:
        return x
    return jnp.pad(x, ((0, rows - r), (0, cols - c)))


def _pick_tile(padded, max_tile, unit):
    """Largest multiple of `unit` that divides `padded` and is <= max_tile."""
    t = max(unit, min(max_tile, padded))
    t = (t // unit) * unit
    while padded % t:
        t -= unit
    return t


def _l2_normalize_rows(x, eps=1e-12):
    # matches torch.nn.functional.normalize(x, p=2, dim=1)
    n = jnp.sqrt(jnp.sum(x * x, axis=1, keepdims=True))
    return x / jnp.maximum(n, eps)


def _supports_bf16_eup():
    # bf16 EUP/VPU exists on v6e / v7x, not on v5e (or older).
    try:
        kind = jax.devices()[0].device_kind.lower()
    except Exception:
        return False
    return not any(t in kind for t in ("v2", "v3", "v4", "v5"))


# ----------------------------- tiled matmul -----------------------------

def _matmul_kernel(a_ref, b_ref, o_ref, acc_ref):
    @pl.when(pl.program_id(2) == 0)
    def _():
        acc_ref[...] = jnp.zeros_like(acc_ref)

    acc_ref[...] += jnp.dot(a_ref[...], b_ref[...],
                            preferred_element_type=jnp.float32)

    @pl.when(pl.program_id(2) == pl.num_programs(2) - 1)
    def _():
        o_ref[...] = acc_ref[...].astype(o_ref.dtype)


def _matmul_tiles(M, K, N, a_itemsize, tm_max, tn_max, tk_max):
    unit_m = max(8, 32 // int(a_itemsize))          # 8 for f32, 16 for bf16
    Mp, Kp, Np = _round_up(M, unit_m), _round_up(K, 128), _round_up(N, 128)
    tm = _pick_tile(Mp, tm_max, unit_m)
    tk = _pick_tile(Kp, tk_max, 128)
    tn = _pick_tile(Np, tn_max, 128)
    # v7x has 2 TensorCores: expose >= 2 parallel blocks along M when the grid
    # would otherwise be a single block (harmless on 1-TC v5e/v6e).
    if (Mp // tm) * (Np // tn) < 2 and Mp >= 256:
        tm = _pick_tile(Mp, max(unit_m, Mp // 2), unit_m)
    return Mp, Kp, Np, tm, tk, tn


def _matmul_padded(a_p, b_p, tm, tn, tk):
    Mp, Kp = a_p.shape
    Kp2, Np = b_p.shape
    assert Kp == Kp2, (a_p.shape, b_p.shape)
    ab, bb = a_p.dtype.itemsize, b_p.dtype.itemsize
    vmem = 2 * (tm * tk * ab + tk * tn * bb + tm * tn * 4) + tm * tn * 4 + (2 << 20)
    return pl.pallas_call(
        _matmul_kernel,
        out_shape=jax.ShapeDtypeStruct((Mp, Np), jnp.float32),
        grid=(Mp // tm, Np // tn, Kp // tk),
        in_specs=[pl.BlockSpec((tm, tk), lambda i, j, k: (i, k)),
                  pl.BlockSpec((tk, tn), lambda i, j, k: (k, j))],
        out_specs=pl.BlockSpec((tm, tn), lambda i, j, k: (i, j)),
        scratch_shapes=[pltpu.VMEM((tm, tn), jnp.float32)],
        compiler_params=pltpu.CompilerParams(
            dimension_semantics=("parallel", "parallel", "arbitrary"),
            vmem_limit_bytes=int(min(max(vmem, 32 << 20), 64 << 20))),
        cost_estimate=pl.CostEstimate(
            flops=int(2 * Mp * Np * Kp),
            transcendentals=0,
            bytes_accessed=int(Mp * Kp * ab + Kp * Np * bb + Mp * Np * 4)),
    )(a_p, b_p)


def pallas_matmul(a, b, *, a_dtype=None, b_dtype=None,
                  tm_max=1024, tn_max=256, tk_max=1024):
    """C = A @ B, tiled + K-accumulated in f32 on the MXU.

    a_dtype/b_dtype can be bf16 on any current TPU (v5e/v6e/v7x all support
    bf16 MXU matmuls); use it for the big HBM-bound adjacency operands.
    """
    M, K = a.shape
    K2, N = b.shape
    assert K == K2, (a.shape, b.shape)
    if a_dtype is not None:
        a = a.astype(a_dtype)
    if b_dtype is not None:
        b = b.astype(b_dtype)
    Mp, Kp, Np, tm, tk, tn = _matmul_tiles(
        M, K, N, a.dtype.itemsize, tm_max, tn_max, tk_max)
    out = _matmul_padded(_pad2d(a, Mp, Kp), _pad2d(b, Kp, Np), tm, tn, tk)
    return out[:M, :N]


def hg_propagate(adj, emb, layer, *, adj_dtype=jnp.bfloat16, emb_dtype=jnp.bfloat16,
                 tm_max=1024, tn_max=256, tk_max=1024):
    """emb <- adj @ emb, `layer` times. The constant adjacency is cast + padded
    exactly once (hoisted out of the per-layer loop)."""
    if layer <= 0:
        return emb
    M, K = adj.shape
    N = emb.shape[1]
    if adj_dtype is not None:
        adj = adj.astype(adj_dtype)
    Mp, Kp, Np, tm, tk, tn = _matmul_tiles(
        M, K, N, adj.dtype.itemsize, tm_max, tn_max, tk_max)
    adj_p = _pad2d(adj, Mp, Kp)                 # hoisted: one cast+pad, reused
    out = emb
    for _ in range(layer):
        emb_p = _pad2d(out.astype(emb_dtype), Kp, Np)
        out = _matmul_padded(adj_p, emb_p, tm, tn, tk)[:M, :N]
    return out


# ---------------- fused symmetric InfoNCE (+ in-kernel Wasserstein mask) ----------------

def _ssl_fused_kernel(*refs, with_mask, inv_temp, thr, n_valid, use_bf16_exp):
    if with_mask:
        (n1_ref, n2_ref, t2T_ref, t1T_ref, mb_ref, sb_ref, maT_ref, saT_ref,
         uidx_ref, om_ref, ou_ref, dm1, du1, dm2, du2) = refs
    else:
        (n1_ref, n2_ref, t2T_ref, t1T_ref, ou_ref, du1, du2) = refs

    k = pl.program_id(1)

    @pl.when(k == 0)
    def _():
        du1[...] = jnp.zeros_like(du1)
        du2[...] = jnp.zeros_like(du2)
        if with_mask:
            dm1[...] = jnp.zeros_like(dm1)
            dm2[...] = jnp.zeros_like(dm2)

    n1 = n1_ref[...]                                   # (tb, D)
    n2 = n2_ref[...]
    # both directions' (tb, tn) similarities on the MXU
    sim1 = jnp.dot(n1, t2T_ref[...], preferred_element_type=jnp.float32)
    sim2 = jnp.dot(n2, t1T_ref[...], preferred_element_type=jnp.float32)
    tn = sim1.shape[1]
    col = jax.lax.broadcasted_iota(jnp.int32, sim1.shape, 1) + k * tn
    valid = col < n_valid                              # in-kernel column validity
    validf = valid.astype(jnp.float32)

    def _exp(s):
        s = s * inv_temp                               # multiply, not divide
        if use_bf16_exp:                               # v6e/v7x: bf16 EUP ~2x
            return jnp.exp(s.astype(jnp.bfloat16)).astype(jnp.float32)
        return jnp.exp(s)                              # v5e: keep f32 exp

    # safe without max-subtraction: rows are L2-normalized, |sim/temp| <= 10
    e1 = _exp(sim1)
    e2 = _exp(sim2)
    du1[...] += jnp.sum(e1 * validf, axis=1, keepdims=True)
    du2[...] += jnp.sum(e2 * validf, axis=1, keepdims=True)

    if with_mask:
        # Batch-only Wasserstein mask, fused: Gram-form distances of the B
        # batch rows vs this table tile (never the (U,U) matrix).
        mb, sb = mb_ref[...], sb_ref[...]              # (tb, D)
        maT, saT = maT_ref[...], saT_ref[...]          # (D, tn)
        gm = jnp.dot(mb, maT, preferred_element_type=jnp.float32)
        gs = jnp.dot(sb, saT, preferred_element_type=jnp.float32)
        d2m = jnp.maximum(jnp.sum(mb * mb, axis=1, keepdims=True)
                          + jnp.sum(maT * maT, axis=0, keepdims=True) - 2.0 * gm, 0.0)
        d2s = jnp.maximum(jnp.sum(sb * sb, axis=1, keepdims=True)
                          + jnp.sum(saT * saT, axis=0, keepdims=True) - 2.0 * gs, 0.0)
        w = jnp.sqrt(d2m) + jnp.sqrt(d2s)
        diag = col == uidx_ref[...]                    # fill_diagonal_(True)[user_inputs]
        maskf = jnp.where(((w > thr) | diag) & valid, 1.0, 0.0)
        dm1[...] += jnp.sum(e1 * maskf, axis=1, keepdims=True)
        dm2[...] += jnp.sum(e2 * maskf, axis=1, keepdims=True)

    @pl.when(k == pl.num_programs(1) - 1)
    def _():
        # -log(exp(pos/t)/den) == log(den) - pos/t; both directions share pos.
        base = -2.0 * inv_temp * jnp.sum(n1 * n2, axis=1, keepdims=True)
        ou_ref[...] = base + jnp.log(du1[...] * du2[...])
        if with_mask:
            om_ref[...] = base + jnp.log(dm1[...] * dm2[...])


def pallas_ssl_fused(nb1, nb2, tab1, tab2, mask_inputs=None, *, temp=0.1,
                     thr=0.0, tb_max=256, tn_max=512, use_bf16_exp=False):
    """Fused symmetric InfoNCE pair:
         loss = ssl(nb1, nb2, tab2) + ssl(nb2, nb1, tab1)
    nb1/nb2: (B, D) row-normalized batch embeddings; tab1/tab2: (N, D)
    row-normalized full tables.  mask_inputs = (mean_b, std_b, mean_all,
    std_all, idx) enables the in-kernel Wasserstein (> thr, diag=True) mask;
    returns (masked_loss, unmasked_loss) if masked, else the unmasked loss."""
    B, D = nb1.shape
    N = tab1.shape[0]
    with_mask = mask_inputs is not None

    Bp = _round_up(B, 8)
    Np = _round_up(N, 128)
    tb = _pick_tile(Bp, tb_max, 8)
    tn = _pick_tile(Np, tn_max, 128)

    f32 = jnp.float32
    row = lambda x: _pad2d(x.astype(f32), Bp, D)
    colT = lambda x: _pad2d(x.astype(f32).T, D, Np)

    inputs = [row(nb1), row(nb2), colT(tab2), colT(tab1)]
    row_spec = pl.BlockSpec((tb, D), lambda i, k: (i, 0))
    colT_spec = pl.BlockSpec((D, tn), lambda i, k: (0, k))
    out_vec_spec = pl.BlockSpec((tb, 1), lambda i, k: (i, 0))
    in_specs = [row_spec, row_spec, colT_spec, colT_spec]

    if with_mask:
        mean_b, std_b, mean_all, std_all, idx = mask_inputs
        uidx = _pad2d(idx.astype(jnp.int32).reshape(B, 1), Bp, 1)
        inputs += [row(mean_b), row(std_b), colT(mean_all), colT(std_all), uidx]
        in_specs += [row_spec, row_spec, colT_spec, colT_spec,
                     pl.BlockSpec((tb, 1), lambda i, k: (i, 0))]
        scratch = [pltpu.VMEM((tb, 1), f32) for _ in range(4)]
        out_shape = (jax.ShapeDtypeStruct((Bp, 1), f32),
                     jax.ShapeDtypeStruct((Bp, 1), f32))
        out_specs = (out_vec_spec, out_vec_spec)
    else:
        scratch = [pltpu.VMEM((tb, 1), f32) for _ in range(2)]
        out_shape = jax.ShapeDtypeStruct((Bp, 1), f32)
        out_specs = out_vec_spec

    kern = functools.partial(
        _ssl_fused_kernel, with_mask=with_mask, inv_temp=float(1.0 / temp),
        thr=float(thr), n_valid=int(N), use_bf16_exp=bool(use_bf16_exp))

    n_mm = 4 if with_mask else 2
    in_bytes = sum(int(x.size) * int(x.dtype.itemsize) for x in inputs)
    cost = pl.CostEstimate(
        flops=int(2 * Bp * Np * D * n_mm + 12 * Bp * Np),
        transcendentals=int(Bp * Np * n_mm),
        bytes_accessed=int(in_bytes + 2 * Bp * 4))

    outs = pl.pallas_call(
        kern,
        out_shape=out_shape,
        grid=(Bp // tb, Np // tn),
        in_specs=in_specs,
        out_specs=out_specs,
        scratch_shapes=scratch,
        compiler_params=pltpu.CompilerParams(
            dimension_semantics=("parallel", "arbitrary")),
        cost_estimate=cost,
    )(*inputs)

    if with_mask:
        om, ou = outs
        return jnp.sum(om[:B, 0]) / B, jnp.sum(ou[:B, 0]) / B
    return jnp.sum(outs[:B, 0]) / B


# ----------------------------- CI4GI forward -----------------------------

def ci4gi_forward(params, graphs, user_inputs, pos_groups, neg_groups, *,
                  num_user, num_item, num_group, layer,
                  user_add_gitem_weight, user_ssl_threshold,
                  user_side_ssl=True, group_side_ssl=True,
                  adj_dtype=jnp.bfloat16, use_bf16_exp=False):
    U, I, G = num_user, num_item, num_group
    D = params["item"].shape[1]
    B = int(user_inputs.shape[0])

    # ----- CI4GI.compute(return_other=True) -----
    ig_emb = jnp.concatenate([params["item"], params["group_interest"]], axis=0)
    ig_emb = hg_propagate(graphs["ItemHG"], ig_emb, layer, adj_dtype=adj_dtype)
    tmp_item_embedding, group_emb_i_side = ig_emb[:I], ig_emb[I:]

    ug_emb = jnp.concatenate([params["user_distinct"], params["group_distinct"]], axis=0)
    ug_emb = hg_propagate(graphs["UserHGTrain"], ug_emb, layer, adj_dtype=adj_dtype)
    user_emb, group_emb_u_side = ug_emb[:U], ug_emb[U:]

    ui_emb = jnp.concatenate([params["user_interest"], tmp_item_embedding], axis=0)
    # Reference runs GAT(ui_emb, adj) but GAT.forward returns mean(stack([x])) == x:
    # the attention output is dead, so it is not computed here (semantics unchanged).
    user_emb_i_side = ui_emb[:U]

    # user-item aggregation, reassociated: user_hg @ [gi_hg @ item | rowsum(gi_hg)]
    gi_item = pallas_matmul(graphs["GIadj"], tmp_item_embedding,
                            a_dtype=adj_dtype, b_dtype=adj_dtype)              # (G, D)
    gi_rowsum = jnp.sum(graphs["GIadj"], axis=1, keepdims=True)                # (G, 1)
    emb_cnt = pallas_matmul(graphs["UserHGSSL"],
                            jnp.concatenate([gi_item, gi_rowsum], axis=1),
                            a_dtype=adj_dtype, b_dtype=jnp.float32)            # (U, D+1)
    user_item_embeds = emb_cnt[:, :D]
    user_item_counts = emb_cnt[:, D:]
    user_item_counts = jnp.where(user_item_counts == 0,
                                 jnp.ones_like(user_item_counts), user_item_counts)
    user_item_avg_embeds = user_item_embeds / user_item_counts
    user_emb_i_side = user_emb_i_side + user_add_gitem_weight * user_item_avg_embeds

    # VAE.encode: mean = user part of ui_emb (== user_interest); logvar = fc1(mean)
    mean = ui_emb[:U]
    logvar = pallas_matmul(mean, params["fc1_w"].T) + params["fc1_b"][None, :]
    std = jnp.exp(0.5 * logvar)
    # TODO(synk): VAE reparameterize/decode and the torch.randn draws in the
    # reference compute() are non-deterministic AND unused downstream; omitted.

    final_u_emb = jnp.concatenate([user_emb, user_emb_i_side], axis=1)           # (U, 2D)
    final_g_emb = jnp.concatenate([group_emb_u_side, group_emb_i_side], axis=1)  # (G, 2D)

    all_user_emb_i_side, all_user_emb_g_side = user_emb_i_side, user_emb
    all_group_emb_i_side, all_group_emb_u_side = group_emb_i_side, group_emb_u_side

    # ----- CI4GI.forward -----
    user_embeds = final_u_emb[user_inputs]
    pos_embed = final_g_emb[pos_groups]
    neg_embed = final_g_emb[neg_groups]

    ego = jnp.concatenate([
        params["user_interest"][user_inputs], params["user_distinct"][user_inputs],
        params["group_interest"][pos_groups], params["group_distinct"][pos_groups],
        params["group_interest"][neg_groups], params["group_distinct"][neg_groups],
    ], axis=0)
    reg_loss = 0.5 * jnp.sum(ego * ego) / float(B)   # tiny; XLA fuses gather + reduce

    user_ssl_loss_1 = jnp.float32(0.0)
    user_ssl_loss_2 = jnp.float32(0.0)
    if user_side_ssl:
        # row-normalization hoisted and shared by batch gathers + full tables
        n_user_i = _l2_normalize_rows(all_user_emb_i_side)
        n_user_g = _l2_normalize_rows(all_user_emb_g_side)
        n_bi = n_user_i[user_inputs]
        n_bg = n_user_g[user_inputs]
        # one kernel: both directions, masked + unmasked, Wasserstein mask fused
        user_ssl_loss_1, user_ssl_loss_2 = pallas_ssl_fused(
            n_bi, n_bg, n_user_i, n_user_g,
            mask_inputs=(mean[user_inputs], std[user_inputs], mean, std, user_inputs),
            temp=0.1, thr=user_ssl_threshold, use_bf16_exp=use_bf16_exp)

    group_ssl_loss_2 = jnp.float32(0.0)
    if group_side_ssl:
        n_group_i = _l2_normalize_rows(all_group_emb_i_side)
        n_group_u = _l2_normalize_rows(all_group_emb_u_side)
        n_pi = n_group_i[pos_groups]
        n_pu = n_group_u[pos_groups]
        # group-side masked loss is never consumed in the reference -> mask path off
        group_ssl_loss_2 = pallas_ssl_fused(
            n_pi, n_pu, n_group_i, n_group_u, mask_inputs=None,
            temp=0.1, use_bf16_exp=use_bf16_exp)

    ssl_loss_1 = user_ssl_loss_1                      # group_ssl_loss_1 == 0 in reference
    ssl_loss_2 = user_ssl_loss_2 + group_ssl_loss_2

    return (user_embeds, pos_embed, neg_embed, reg_loss, ssl_loss_1, ssl_loss_2,
            all_user_emb_i_side, all_user_emb_g_side)


# ----------------------------- main -----------------------------

if __name__ == "__main__":
    U, I, G, D = 12, 16, 8, 32          # num_user, num_item, num_group, emb_dim
    B = 4                               # batch of (user, pos_group, neg_group)
    LAYER = 1
    USER_ADD_GITEM_WEIGHT = 0.5
    USER_SSL_THRESHOLD = 0.8

    key = jax.random.PRNGKey(0)
    ks = jax.random.split(key, 16)
    bound = float(D) ** -0.5

    params = dict(
        user_distinct=0.1 * jax.random.normal(ks[0], (U, D), jnp.float32),
        user_interest=0.1 * jax.random.normal(ks[1], (U, D), jnp.float32),
        user_interest_fangcha=0.1 * jax.random.normal(ks[2], (U, D), jnp.float32),  # unused downstream
        group_distinct=0.1 * jax.random.normal(ks[3], (G, D), jnp.float32),
        group_interest=0.1 * jax.random.normal(ks[4], (G, D), jnp.float32),
        item=0.1 * jax.random.normal(ks[5], (I, D), jnp.float32),
        gat_a=0.1 * jax.random.normal(ks[6], (2 * D, 1), jnp.float32),  # unused: GAT output is dead
        fc1_w=jax.random.uniform(ks[7], (D, D), jnp.float32, -bound, bound),
        fc1_b=jax.random.uniform(ks[8], (D,), jnp.float32, -bound, bound),
    )

    def rownorm(a):
        s = jnp.sum(a, axis=1, keepdims=True)
        return a / jnp.maximum(s, 1.0)

    graphs = dict(
        ItemHG=rownorm((jax.random.uniform(ks[9], (I + G, I + G)) > 0.5).astype(jnp.float32)),
        UserHGTrain=rownorm((jax.random.uniform(ks[10], (U + G, U + G)) > 0.5).astype(jnp.float32)),
        UserHGSSL=(jax.random.uniform(ks[11], (U, G)) > 0.5).astype(jnp.float32),
        GIadj=(jax.random.uniform(ks[12], (G, I)) > 0.5).astype(jnp.float32),
    )

    user_inputs = jnp.array([0, 3, 5, 7], dtype=jnp.int32)
    pos_groups = jnp.array([1, 2, 4, 6], dtype=jnp.int32)
    neg_groups = jnp.array([0, 5, 3, 7], dtype=jnp.int32)

    forward = jax.jit(functools.partial(
        ci4gi_forward,
        num_user=U, num_item=I, num_group=G, layer=LAYER,
        user_add_gitem_weight=USER_ADD_GITEM_WEIGHT,
        user_ssl_threshold=USER_SSL_THRESHOLD,
        user_side_ssl=True, group_side_ssl=True,
        adj_dtype=jnp.bfloat16,
        use_bf16_exp=_supports_bf16_eup()))

    outs = forward(params, graphs, user_inputs, pos_groups, neg_groups)
    outs = jax.block_until_ready(outs)

    assert outs[0].shape == (B, 2 * D)      # user_embeds
    assert outs[1].shape == (B, 2 * D)      # pos_embed
    assert outs[2].shape == (B, 2 * D)      # neg_embed
    assert outs[6].shape == (U, D)          # all_user_emb_i_side
    assert outs[7].shape == (U, D)          # all_user_emb_g_side
    assert all(bool(jnp.all(jnp.isfinite(o))) for o in jax.tree_util.tree_leaves(outs))

    print("KERNEL_OK")
</pallas_src>

<mosaic_0001>
module attributes {stable_mosaic.version = 11 : i64} {
  func.func @_matmul_kernel(%arg0: i32, %arg1: i32, %arg2: i32, %arg3: memref<32x128xbf16, #tpu.memory_space<vmem>>, %arg4: memref<128x128xbf16, #tpu.memory_space<vmem>>, %arg5: memref<32x128xf32, #tpu.memory_space<vmem>>, %arg6: memref<32x128xf32, #tpu.memory_space<vmem>>) attributes {dimension_semantics = [#tpu.dimension_semantics<parallel>, #tpu.dimension_semantics<parallel>, #tpu.dimension_semantics<arbitrary>], iteration_bounds = array<i64: 1, 1, 1>, scalar_prefetch = 0 : i64, scratch_operands = 1 : i64, tpu.core_type = #tpu.core_type<tc>, window_params = [{transform_indices = @transform_0, window_bounds = array<i64: 32, 128>}, {transform_indices = @transform_1, window_bounds = array<i64: 128, 128>}, {transform_indices = @transform_2, window_bounds = array<i64: 32, 128>}]} {
    %c0_i32 = arith.constant 0 : i32
    %0 = arith.cmpi eq, %arg2, %c0_i32 : i32
    %1 = arith.extui %0 : i1 to i32
    %c0_i32_0 = arith.constant 0 : i32
    %2 = arith.cmpi ne, %1, %c0_i32_0 : i32
    scf.if %2 {
      %cst_10 = arith.constant 0.000000e+00 : f32
      %12 = vector.broadcast %cst_10 : f32 to vector<32x128xf32>
      %c0_11 = arith.constant 0 : index
      %c0_12 = arith.constant 0 : index
      %13 = vector.load %arg6[%c0_11, %c0_12] : memref<32x128xf32, #tpu.memory_space<vmem>>, vector<32x128xf32>
      tpu.vector_store %arg6[%c0_11, %c0_12], %12 {strides = array<i32>} : memref<32x128xf32, #tpu.memory_space<vmem>>, vector<32x128xf32>,
    } else {
    }
    %c0 = arith.constant 0 : index
    %c0_1 = arith.constant 0 : index
    %3 = vector.load %arg6[%c0, %c0_1] : memref<32x128xf32, #tpu.memory_space<vmem>>, vector<32x128xf32>
    %c0_2 = arith.constant 0 : index
    %c0_3 = arith.constant 0 : index
    %4 = vector.load %arg3[%c0_2, %c0_3] : memref<32x128xbf16, #tpu.memory_space<vmem>>, vector<32x128xbf16>
    %c0_4 = arith.constant 0 : index
    %c0_5 = arith.constant 0 : index
    %5 = vector.load %arg4[%c0_4, %c0_5] : memref<128x128xbf16, #tpu.memory_space<vmem>>, vector<128x128xbf16>
    %cst = arith.constant dense<0.000000e+00> : vector<32x128xf32>
    %6 = tpu.matmul %4, %5, %cst {dimension_numbers = #tpu.dot_dimension_numbers<[1], [0], [0], [1], [0, 0, 1, 1], [], []>} : vector<32x128xbf16>, vector<128x128xbf16>, vector<32x128xf32> -> vector<32x128xf32>
    %7 = arith.addf %3, %6 : vector<32x128xf32>
    %c0_6 = arith.constant 0 : index
    %c0_7 = arith.constant 0 : index
    %8 = vector.load %arg6[%c0_6, %c0_7] : memref<32x128xf32, #tpu.memory_space<vmem>>, vector<32x128xf32>
    tpu.vector_store %arg6[%c0_6, %c0_7], %7 {strides = array<i32>} : memref<32x128xf32, #tpu.memory_space<vmem>>, vector<32x128xf32>,
    %c0_i32_8 = arith.constant 0 : i32
    %9 = arith.cmpi eq, %arg2, %c0_i32_8 : i32
    %10 = arith.extui %9 : i1 to i32
    %c0_i32_9 = arith.constant 0 : i32
    %11 = arith.cmpi ne, %10, %c0_i32_9 : i32
    scf.if %11 {
      %c0_10 = arith.constant 0 : index
      %c0_11 = arith.constant 0 : index
      %12 = vector.load %arg6[%c0_10, %c0_11] : memref<32x128xf32, #tpu.memory_space<vmem>>, vector<32x128xf32>
      %c0_12 = arith.constant 0 : index
      %c0_13 = arith.constant 0 : index
      %13 = vector.load %arg5[%c0_12, %c0_13] : memref<32x128xf32, #tpu.memory_space<vmem>>, vector<32x128xf32>
      tpu.vector_store %arg5[%c0_12, %c0_13], %12 {strides = array<i32>} : memref<32x128xf32, #tpu.memory_space<vmem>>, vector<32x128xf32>,
    } else {
    }
    return
  }
  func.func @transform_0(%arg0: i32, %arg1: i32, %arg2: i32) -> (i32, i32) {
    %c0_i32 = arith.constant 0 : i32
    return %arg0, %arg2 : i32, i32
  }
  func.func @transform_1(%arg0: i32, %arg1: i32, %arg2: i32) -> (i32, i32) {
    %c0_i32 = arith.constant 0 : i32
    return %arg2, %arg1 : i32, i32
  }
  func.func @transform_2(%arg0: i32, %arg1: i32, %arg2: i32) -> (i32, i32) {
    %c0_i32 = arith.constant 0 : i32
    return %arg0, %arg1 : i32, i32
  }
}

module attributes {stable_mosaic.version = 11 : i64} {
  func.func @_matmul_kernel(%arg0: i32, %arg1: i32, %arg2: i32, %arg3: memref<16x128xbf16, #tpu.memory_space<vmem>>, %arg4: memref<128x128xbf16, #tpu.memory_space<vmem>>, %arg5: memref<16x128xf32, #tpu.memory_space<vmem>>, %arg6: memref<16x128xf32, #tpu.memory_space<vmem>>) attributes {dimension_semantics = [#tpu.dimension_semantics<parallel>, #tpu.dimension_semantics<parallel>, #tpu.dimension_semantics<arbitrary>], iteration_bounds = array<i64: 1, 1, 1>, scalar_prefetch = 0 : i64, scratch_operands = 1 : i64, tpu.core_type = #tpu.core_type<tc>, window_params = [{transform_indices = @transform_0, window_bounds = array<i64: 16, 128>}, {transform_indices = @transform_1, window_bounds = array<i64: 128, 128>}, {transform_indices = @transform_2, window_bounds = array<i64: 16, 128>}]} {
    %c0_i32 = arith.constant 0 : i32
    %0 = arith.cmpi eq, %arg2, %c0_i32 : i32
    %1 = arith.extui %0 : i1 to i32
    %c0_i32_0 = arith.constant 0 : i32
    %2 = arith.cmpi ne, %1, %c0_i32_0 : i32
    scf.if %2 {
      %cst_10 = arith.constant 0.000000e+00 : f32
      %12 = vector.broadcast %cst_10 : f32 to vector<16x128xf32>
      %c0_11 = arith.constant 0 : index
      %c0_12 = arith.constant 0 : index
      %13 = vector.load %arg6[%c0_11, %c0_12] : memref<16x128xf32, #tpu.memory_space<vmem>>, vector<16x128xf32>
      tpu.vector_store %arg6[%c0_11, %c0_12], %12 {strides = array<i32>} : memref<16x128xf32, #tpu.memory_space<vmem>>, vector<16x128xf32>,
    } else {
    }
    %c0 = arith.constant 0 : index
    %c0_1 = arith.constant 0 : index
    %3 = vector.load %arg6[%c0, %c0_1] : memref<16x128xf32, #tpu.memory_space<vmem>>, vector<16x128xf32>
    %c0_2 = arith.constant 0 : index
    %c0_3 = arith.constant 0 : index
    %4 = vector.load %arg3[%c0_2, %c0_3] : memref<16x128xbf16, #tpu.memory_space<vmem>>, vector<16x128xbf16>
    %c0_4 = arith.constant 0 : index
    %c0_5 = arith.constant 0 : index
    %5 = vector.load %arg4[%c0_4, %c0_5] : memref<128x128xbf16, #tpu.memory_space<vmem>>, vector<128x128xbf16>
    %cst = arith.constant dense<0.000000e+00> : vector<16x128xf32>
    %6 = tpu.matmul %4, %5, %cst {dimension_numbers = #tpu.dot_dimension_numbers<[1], [0], [0], [1], [0, 0, 1, 1], [], []>} : vector<16x128xbf16>, vector<128x128xbf16>, vector<16x128xf32> -> vector<16x128xf32>
    %7 = arith.addf %3, %6 : vector<16x128xf32>
    %c0_6 = arith.constant 0 : index
    %c0_7 = arith.constant 0 : index
    %8 = vector.load %arg6[%c0_6, %c0_7] : memref<16x128xf32, #tpu.memory_space<vmem>>, vector<16x128xf32>
    tpu.vector_store %arg6[%c0_6, %c0_7], %7 {strides = array<i32>} : memref<16x128xf32, #tpu.memory_space<vmem>>, vector<16x128xf32>,
    %c0_i32_8 = arith.constant 0 : i32
    %9 = arith.cmpi eq, %arg2, %c0_i32_8 : i32
    %10 = arith.extui %9 : i1 to i32
    %c0_i32_9 = arith.constant 0 : i32
    %11 = arith.cmpi ne, %10, %c0_i32_9 : i32
    scf.if %11 {
      %c0_10 = arith.constant 0 : index
      %c0_11 = arith.constant 0 : index
      %12 = vector.load %arg6[%c0_10, %c0_11] : memref<16x128xf32, #tpu.memory_space<vmem>>, vector<16x128xf32>
      %c0_12 = arith.constant 0 : index
      %c0_13 = arith.constant 0 : index
      %13 = vector.load %arg5[%c0_12, %c0_13] : memref<16x128xf32, #tpu.memory_space<vmem>>, vector<16x128xf32>
      tpu.vector_store %arg5[%c0_12, %c0_13], %12 {strides = array<i32>} : memref<16x128xf32, #tpu.memory_space<vmem>>, vector<16x128xf32>,
    } else {
    }
    return
  }
  func.func @transform_0(%arg0: i32, %arg1: i32, %arg2: i32) -> (i32, i32) {
    %c0_i32 = arith.constant 0 : i32
    return %arg0, %arg2 : i32, i32
  }
  func.func @transform_1(%arg0: i32, %arg1: i32, %arg2: i32) -> (i32, i32) {
    %c0_i32 = arith.constant 0 : i32
    return %arg2, %arg1 : i32, i32
  }
  func.func @transform_2(%arg0: i32, %arg1: i32, %arg2: i32) -> (i32, i32) {
    %c0_i32 = arith.constant 0 : i32
    return %arg0, %arg1 : i32, i32
  }
}

module attributes {stable_mosaic.version = 11 : i64} {
  func.func @_matmul_kernel(%arg0: i32, %arg1: i32, %arg2: i32, %arg3: memref<16x128xbf16, #tpu.memory_space<vmem>>, %arg4: memref<128x128xf32, #tpu.memory_space<vmem>>, %arg5: memref<16x128xf32, #tpu.memory_space<vmem>>, %arg6: memref<16x128xf32, #tpu.memory_space<vmem>>) attributes {dimension_semantics = [#tpu.dimension_semantics<parallel>, #tpu.dimension_semantics<parallel>, #tpu.dimension_semantics<arbitrary>], iteration_bounds = array<i64: 1, 1, 1>, scalar_prefetch = 0 : i64, scratch_operands = 1 : i64, tpu.core_type = #tpu.core_type<tc>, window_params = [{transform_indices = @transform_0, window_bounds = array<i64: 16, 128>}, {transform_indices = @transform_1, window_bounds = array<i64: 128, 128>}, {transform_indices = @transform_2, window_bounds = array<i64: 16, 128>}]} {
    %c0_i32 = arith.constant 0 : i32
    %0 = arith.cmpi eq, %arg2, %c0_i32 : i32
    %1 = arith.extui %0 : i1 to i32
    %c0_i32_0 = arith.constant 0 : i32
    %2 = arith.cmpi ne, %1, %c0_i32_0 : i32
    scf.if %2 {
      %cst_10 = arith.constant 0.000000e+00 : f32
      %12 = vector.broadcast %cst_10 : f32 to vector<16x128xf32>
      %c0_11 = arith.constant 0 : index
      %c0_12 = arith.constant 0 : index
      %13 = vector.load %arg6[%c0_11, %c0_12] : memref<16x128xf32, #tpu.memory_space<vmem>>, vector<16x128xf32>
      tpu.vector_store %arg6[%c0_11, %c0_12], %12 {strides = array<i32>} : memref<16x128xf32, #tpu.memory_space<vmem>>, vector<16x128xf32>,
    } else {
    }
    %c0 = arith.constant 0 : index
    %c0_1 = arith.constant 0 : index
    %3 = vector.load %arg6[%c0, %c0_1] : memref<16x128xf32, #tpu.memory_space<vmem>>, vector<16x128xf32>
    %c0_2 = arith.constant 0 : index
    %c0_3 = arith.constant 0 : index
    %4 = vector.load %arg3[%c0_2, %c0_3] : memref<16x128xbf16, #tpu.memory_space<vmem>>, vector<16x128xbf16>
    %c0_4 = arith.constant 0 : index
    %c0_5 = arith.constant 0 : index
    %5 = vector.load %arg4[%c0_4, %c0_5] : memref<128x128xf32, #tpu.memory_space<vmem>>, vector<128x128xf32>
    %cst = arith.constant dense<0.000000e+00> : vector<16x128xf32>
    %6 = tpu.matmul %4, %5, %cst {dimension_numbers = #tpu.dot_dimension_numbers<[1], [0], [0], [1], [0, 0, 1, 1], [], []>} : vector<16x128xbf16>, vector<128x128xf32>, vector<16x128xf32> -> vector<16x128xf32>
    %7 = arith.addf %3, %6 : vector<16x128xf32>
    %c0_6 = arith.constant 0 : index
    %c0_7 = arith.constant 0 : index
    %8 = vector.load %arg6[%c0_6, %c0_7] : memref<16x128xf32, #tpu.memory_space<vmem>>, vector<16x128xf32>
    tpu.vector_store %arg6[%c0_6, %c0_7], %7 {strides = array<i32>} : memref<16x128xf32, #tpu.memory_space<vmem>>, vector<16x128xf32>,
    %c0_i32_8 = arith.constant 0 : i32
    %9 = arith.cmpi eq, %arg2, %c0_i32_8 : i32
    %10 = arith.extui %9 : i1 to i32
    %c0_i32_9 = arith.constant 0 : i32
    %11 = arith.cmpi ne, %10, %c0_i32_9 : i32
    scf.if %11 {
      %c0_10 = arith.constant 0 : index
      %c0_11 = arith.constant 0 : index
      %12 = vector.load %arg6[%c0_10, %c0_11] : memref<16x128xf32, #tpu.memory_space<vmem>>, vector<16x128xf32>
      %c0_12 = arith.constant 0 : index
      %c0_13 = arith.constant 0 : index
      %13 = vector.load %arg5[%c0_12, %c0_13] : memref<16x128xf32, #tpu.memory_space<vmem>>, vector<16x128xf32>
      tpu.vector_store %arg5[%c0_12, %c0_13], %12 {strides = array<i32>} : memref<16x128xf32, #tpu.memory_space<vmem>>, vector<16x128xf32>,
    } else {
    }
    return
  }
  func.func @transform_0(%arg0: i32, %arg1: i32, %arg2: i32) -> (i32, i32) {
    %c0_i32 = arith.constant 0 : i32
    return %arg0, %arg2 : i32, i32
  }
  func.func @transform_1(%arg0: i32, %arg1: i32, %arg2: i32) -> (i32, i32) {
    %c0_i32 = arith.constant 0 : i32
    return %arg2, %arg1 : i32, i32
  }
  func.func @transform_2(%arg0: i32, %arg1: i32, %arg2: i32) -> (i32, i32) {
    %c0_i32 = arith.constant 0 : i32
    return %arg0, %arg1 : i32, i32
  }
}

module attributes {stable_mosaic.version = 11 : i64} {
  func.func @_matmul_kernel(%arg0: i32, %arg1: i32, %arg2: i32, %arg3: memref<16x128xf32, #tpu.memory_space<vmem>>, %arg4: memref<128x128xf32, #tpu.memory_space<vmem>>, %arg5: memref<16x128xf32, #tpu.memory_space<vmem>>, %arg6: memref<16x128xf32, #tpu.memory_space<vmem>>) attributes {dimension_semantics = [#tpu.dimension_semantics<parallel>, #tpu.dimension_semantics<parallel>, #tpu.dimension_semantics<arbitrary>], iteration_bounds = array<i64: 1, 1, 1>, scalar_prefetch = 0 : i64, scratch_operands = 1 : i64, tpu.core_type = #tpu.core_type<tc>, window_params = [{transform_indices = @transform_0, window_bounds = array<i64: 16, 128>}, {transform_indices = @transform_1, window_bounds = array<i64: 128, 128>}, {transform_indices = @transform_2, window_bounds = array<i64: 16, 128>}]} {
    %c0_i32 = arith.constant 0 : i32
    %0 = arith.cmpi eq, %arg2, %c0_i32 : i32
    %1 = arith.extui %0 : i1 to i32
    %c0_i32_0 = arith.constant 0 : i32
    %2 = arith.cmpi ne, %1, %c0_i32_0 : i32
    scf.if %2 {
      %cst_10 = arith.constant 0.000000e+00 : f32
      %12 = vector.broadcast %cst_10 : f32 to vector<16x128xf32>
      %c0_11 = arith.constant 0 : index
      %c0_12 = arith.constant 0 : index
      %13 = vector.load %arg6[%c0_11, %c0_12] : memref<16x128xf32, #tpu.memory_space<vmem>>, vector<16x128xf32>
      tpu.vector_store %arg6[%c0_11, %c0_12], %12 {strides = array<i32>} : memref<16x128xf32, #tpu.memory_space<vmem>>, vector<16x128xf32>,
    } else {
    }
    %c0 = arith.constant 0 : index
    %c0_1 = arith.constant 0 : index
    %3 = vector.load %arg6[%c0, %c0_1] : memref<16x128xf32, #tpu.memory_space<vmem>>, vector<16x128xf32>
    %c0_2 = arith.constant 0 : index
    %c0_3 = arith.constant 0 : index
    %4 = vector.load %arg3[%c0_2, %c0_3] : memref<16x128xf32, #tpu.memory_space<vmem>>, vector<16x128xf32>
    %c0_4 = arith.constant 0 : index
    %c0_5 = arith.constant 0 : index
    %5 = vector.load %arg4[%c0_4, %c0_5] : memref<128x128xf32, #tpu.memory_space<vmem>>, vector<128x128xf32>
    %cst = arith.constant dense<0.000000e+00> : vector<16x128xf32>
    %6 = tpu.matmul %4, %5, %cst {dimension_numbers = #tpu.dot_dimension_numbers<[1], [0], [0], [1], [0, 0, 1, 1], [], []>} : vector<16x128xf32>, vector<128x128xf32>, vector<16x128xf32> -> vector<16x128xf32>
    %7 = arith.addf %3, %6 : vector<16x128xf32>
    %c0_6 = arith.constant 0 : index
    %c0_7 = arith.constant 0 : index
    %8 = vector.load %arg6[%c0_6, %c0_7] : memref<16x128xf32, #tpu.memory_space<vmem>>, vector<16x128xf32>
    tpu.vector_store %arg6[%c0_6, %c0_7], %7 {strides = array<i32>} : memref<16x128xf32, #tpu.memory_space<vmem>>, vector<16x128xf32>,
    %c0_i32_8 = arith.constant 0 : i32
    %9 = arith.cmpi eq, %arg2, %c0_i32_8 : i32
    %10 = arith.extui %9 : i1 to i32
    %c0_i32_9 = arith.constant 0 : i32
    %11 = arith.cmpi ne, %10, %c0_i32_9 : i32
    scf.if %11 {
      %c0_10 = arith.constant 0 : index
      %c0_11 = arith.constant 0 : index
      %12 = vector.load %arg6[%c0_10, %c0_11] : memref<16x128xf32, #tpu.memory_space<vmem>>, vector<16x128xf32>
      %c0_12 = arith.constant 0 : index
      %c0_13 = arith.constant 0 : index
      %13 = vector.load %arg5[%c0_12, %c0_13] : memref<16x128xf32, #tpu.memory_space<vmem>>, vector<16x128xf32>
      tpu.vector_store %arg5[%c0_12, %c0_13], %12 {strides = array<i32>} : memref<16x128xf32, #tpu.memory_space<vmem>>, vector<16x128xf32>,
    } else {
    }
    return
  }
  func.func @transform_0(%arg0: i32, %arg1: i32, %arg2: i32) -> (i32, i32) {
    %c0_i32 = arith.constant 0 : i32
    return %arg0, %arg2 : i32, i32
  }
  func.func @transform_1(%arg0: i32, %arg1: i32, %arg2: i32) -> (i32, i32) {
    %c0_i32 = arith.constant 0 : i32
    return %arg2, %arg1 : i32, i32
  }
  func.func @transform_2(%arg0: i32, %arg1: i32, %arg2: i32) -> (i32, i32) {
    %c0_i32 = arith.constant 0 : i32
    return %arg0, %arg1 : i32, i32
  }
}

module attributes {stable_mosaic.version = 11 : i64} {
  func.func @_ssl_fused_kernel(%arg0: i32, %arg1: i32, %arg2: memref<8x32xf32, #tpu.memory_space<vmem>>, %arg3: memref<8x32xf32, #tpu.memory_space<vmem>>, %arg4: memref<32x128xf32, #tpu.memory_space<vmem>>, %arg5: memref<32x128xf32, #tpu.memory_space<vmem>>, %arg6: memref<8x32xf32, #tpu.memory_space<vmem>>, %arg7: memref<8x32xf32, #tpu.memory_space<vmem>>, %arg8: memref<32x128xf32, #tpu.memory_space<vmem>>, %arg9: memref<32x128xf32, #tpu.memory_space<vmem>>, %arg10: memref<8x1xi32, #tpu.memory_space<vmem>>, %arg11: memref<8x1xf32, #tpu.memory_space<vmem>>, %arg12: memref<8x1xf32, #tpu.memory_space<vmem>>, %arg13: memref<8x1xf32, #tpu.memory_space<vmem>>, %arg14: memref<8x1xf32, #tpu.memory_space<vmem>>, %arg15: memref<8x1xf32, #tpu.memory_space<vmem>>, %arg16: memref<8x1xf32, #tpu.memory_space<vmem>>) attributes {dimension_semantics = [#tpu.dimension_semantics<parallel>, #tpu.dimension_semantics<arbitrary>], iteration_bounds = array<i64: 1, 1>, scalar_prefetch = 0 : i64, scratch_operands = 4 : i64, tpu.core_type = #tpu.core_type<tc>, window_params = [{transform_indices = @transform_0, window_bounds = array<i64: 8, 32>}, {transform_indices = @transform_1, window_bounds = array<i64: 8, 32>}, {transform_indices = @transform_2, window_bounds = array<i64: 32, 128>}, {transform_indices = @transform_3, window_bounds = array<i64: 32, 128>}, {transform_indices = @transform_4, window_bounds = array<i64: 8, 32>}, {transform_indices = @transform_5, window_bounds = array<i64: 8, 32>}, {transform_indices = @transform_6, window_bounds = array<i64: 32, 128>}, {transform_indices = @transform_7, window_bounds = array<i64: 32, 128>}, {transform_indices = @transform_8, window_bounds = array<i64: 8, 1>}, {transform_indices = @transform_9, window_bounds = array<i64: 8, 1>}, {transform_indices = @transform_10, window_bounds = array<i64: 8, 1>}]} {
    %c0_i32 = arith.constant 0 : i32
    %0 = arith.cmpi eq, %arg1, %c0_i32 : i32
    %1 = arith.extui %0 : i1 to i32
    %c0_i32_0 = arith.constant 0 : i32
    %2 = arith.cmpi ne, %1, %c0_i32_0 : i32
    scf.if %2 {
      %cst_56 = arith.constant 0.000000e+00 : f32
      %101 = vector.broadcast %cst_56 : f32 to vector<8x1xf32>
      %c0_57 = arith.constant 0 : index
      %c0_58 = arith.constant 0 : index
      %102 = vector.load %arg14[%c0_57, %c0_58] : memref<8x1xf32, #tpu.memory_space<vmem>>, vector<8x1xf32>
      tpu.vector_store %arg14[%c0_57, %c0_58], %101 {strides = array<i32>} : memref<8x1xf32, #tpu.memory_space<vmem>>, vector<8x1xf32>,
      %cst_59 = arith.constant 0.000000e+00 : f32
      %103 = vector.broadcast %cst_59 : f32 to vector<8x1xf32>
      %c0_60 = arith.constant 0 : index
      %c0_61 = arith.constant 0 : index
      %104 = vector.load %arg16[%c0_60, %c0_61] : memref<8x1xf32, #tpu.memory_space<vmem>>, vector<8x1xf32>
      tpu.vector_store %arg16[%c0_60, %c0_61], %103 {strides = array<i32>} : memref<8x1xf32, #tpu.memory_space<vmem>>, vector<8x1xf32>,
      %cst_62 = arith.constant 0.000000e+00 : f32
      %105 = vector.broadcast %cst_62 : f32 to vector<8x1xf32>
      %c0_63 = arith.constant 0 : index
      %c0_64 = arith.constant 0 : index
      %106 = vector.load %arg13[%c0_63, %c0_64] : memref<8x1xf32, #tpu.memory_space<vmem>>, vector<8x1xf32>
      tpu.vector_store %arg13[%c0_63, %c0_64], %105 {strides = array<i32>} : memref<8x1xf32, #tpu.memory_space<vmem>>, vector<8x1xf32>,
      %cst_65 = arith.constant 0.000000e+00 : f32
      %107 = vector.broadcast %cst_65 : f32 to vector<8x1xf32>
      %c0_66 = arith.constant 0 : index
      %c0_67 = arith.constant 0 : index
      %108 = vector.load %arg15[%c0_66, %c0_67] : memref<8x1xf32, #tpu.memory_space<vmem>>, vector<8x1xf32>
      tpu.vector_store %arg15[%c0_66, %c0_67], %107 {strides = array<i32>} : memref<8x1xf32, #tpu.memory_space<vmem>>, vector<8x1xf32>,
    } else {
    }
    %c0 = arith.constant 0 : index
    %c0_1 = arith.constant 0 : index
    %3 = vector.load %arg2[%c0, %c0_1] : memref<8x32xf32, #tpu.memory_space<vmem>>, vector<8x32xf32>
    %c0_2 = arith.constant 0 : index
    %c0_3 = arith.constant 0 : index
    %4 = vector.load %arg3[%c0_2, %c0_3] : memref<8x32xf32, #tpu.memory_space<vmem>>, vector<8x32xf32>
    %c0_4 = arith.constant 0 : index
    %c0_5 = arith.constant 0 : index
    %5 = vector.load %arg4[%c0_4, %c0_5] : memref<32x128xf32, #tpu.memory_space<vmem>>, vector<32x128xf32>
    %cst = arith.constant dense<0.000000e+00> : vector<8x128xf32>
    %6 = tpu.matmul %3, %5, %cst {dimension_numbers = #tpu.dot_dimension_numbers<[1], [0], [0], [1], [0, 0, 1, 1], [], []>} : vector<8x32xf32>, vector<32x128xf32>, vector<8x128xf32> -> vector<8x128xf32>
    %c0_6 = arith.constant 0 : index
    %c0_7 = arith.constant 0 : index
    %7 = vector.load %arg5[%c0_6, %c0_7] : memref<32x128xf32, #tpu.memory_space<vmem>>, vector<32x128xf32>
    %cst_8 = arith.constant dense<0.000000e+00> : vector<8x128xf32>
    %8 = tpu.matmul %4, %7, %cst_8 {dimension_numbers = #tpu.dot_dimension_numbers<[1], [0], [0], [1], [0, 0, 1, 1], [], []>} : vector<8x32xf32>, vector<32x128xf32>, vector<8x128xf32> -> vector<8x128xf32>
    %9 = tpu.iota {dimensions = array<i32: 1>} : vector<8x128xi32>
    %c128_i32 = arith.constant 128 : i32
    %10 = arith.muli %arg1, %c128_i32 : i32
    %11 = vector.broadcast %10 : i32 to vector<8x128xi32>
    %12 = arith.addi %9, %11 : vector<8x128xi32>
    %c12_i32 = arith.constant 12 : i32
    %13 = vector.broadcast %c12_i32 : i32 to vector<8x128xi32>
    %14 = arith.cmpi slt, %12, %13 : vector<8x128xi32>
    %15 = arith.extui %14 : vector<8x128xi1> to vector<8x128xi32>
    %16 = arith.sitofp %15 : vector<8x128xi32> to vector<8x128xf32>
    %cst_9 = arith.constant 1.000000e+01 : f32
    %17 = vector.broadcast %cst_9 : f32 to vector<8x128xf32>
    %18 = arith.mulf %6, %17 : vector<8x128xf32>
    %19 = arith.truncf %18 : vector<8x128xf32> to vector<8x128xbf16>
    %20 = math.exp %19 : vector<8x128xbf16>
    %21 = arith.extf %20 : vector<8x128xbf16> to vector<8x128xf32>
    %cst_10 = arith.constant 1.000000e+01 : f32
    %22 = vector.broadcast %cst_10 : f32 to vector<8x128xf32>
    %23 = arith.mulf %8, %22 : vector<8x128xf32>
    %24 = arith.truncf %23 : vector<8x128xf32> to vector<8x128xbf16>
    %25 = math.exp %24 : vector<8x128xbf16>
    %26 = arith.extf %25 : vector<8x128xbf16> to vector<8x128xf32>
    %c0_11 = arith.constant 0 : index
    %c0_12 = arith.constant 0 : index
    %27 = vector.load %arg14[%c0_11, %c0_12] : memref<8x1xf32, #tpu.memory_space<vmem>>, vector<8x1xf32>
    %28 = arith.mulf %21, %16 : vector<8x128xf32>
    %cst_13 = arith.constant dense<0.000000e+00> : vector<8xf32>
    %29 = vector.multi_reduction <add>, %28, %cst_13 [1] : vector<8x128xf32> to vector<8xf32>
    %30 = vector.shape_cast %29 : vector<8xf32> to vector<8x1xf32>
    %31 = arith.addf %27, %30 : vector<8x1xf32>
    %c0_14 = arith.constant 0 : index
    %c0_15 = arith.constant 0 : index
    %32 = vector.load %arg14[%c0_14, %c0_15] : memref<8x1xf32, #tpu.memory_space<vmem>>, vector<8x1xf32>
    tpu.vector_store %arg14[%c0_14, %c0_15], %31 {strides = array<i32>} : memref<8x1xf32, #tpu.memory_space<vmem>>, vector<8x1xf32>,
    %c0_16 = arith.constant 0 : index
    %c0_17 = arith.constant 0 : index
    %33 = vector.load %arg16[%c0_16, %c0_17] : memref<8x1xf32, #tpu.memory_space<vmem>>, vector<8x1xf32>
    %34 = arith.mulf %26, %16 : vector<8x128xf32>
    %cst_18 = arith.constant dense<0.000000e+00> : vector<8xf32>
    %35 = vector.multi_reduction <add>, %34, %cst_18 [1] : vector<8x128xf32> to vector<8xf32>
    %36 = vector.shape_cast %35 : vector<8xf32> to vector<8x1xf32>
    %37 = arith.addf %33, %36 : vector<8x1xf32>
    %c0_19 = arith.constant 0 : index
    %c0_20 = arith.constant 0 : index
    %38 = vector.load %arg16[%c0_19, %c0_20] : memref<8x1xf32, #tpu.memory_space<vmem>>, vector<8x1xf32>
    tpu.vector_store %arg16[%c0_19, %c0_20], %37 {strides = array<i32>} : memref<8x1xf32, #tpu.memory_space<vmem>>, vector<8x1xf32>,
    %c0_21 = arith.constant 0 : index
    %c0_22 = arith.constant 0 : index
    %39 = vector.load %arg6[%c0_21, %c0_22] : memref<8x32xf32, #tpu.memory_space<vmem>>, vector<8x32xf32>
    %c0_23 = arith.constant 0 : index
    %c0_24 = arith.constant 0 : index
    %40 = vector.load %arg7[%c0_23, %c0_24] : memref<8x32xf32, #tpu.memory_space<vmem>>, vector<8x32xf32>
    %c0_25 = arith.constant 0 : index
    %c0_26 = arith.constant 0 : index
    %41 = vector.load %arg8[%c0_25, %c0_26] : memref<32x128xf32, #tpu.memory_space<vmem>>, vector<32x128xf32>
    %c0_27 = arith.constant 0 : index
    %c0_28 = arith.constant 0 : index
    %42 = vector.load %arg9[%c0_27, %c0_28] : memref<32x128xf32, #tpu.memory_space<vmem>>, vector<32x128xf32>
    %cst_29 = arith.constant dense<0.000000e+00> : vector<8x128xf32>
    %43 = tpu.matmul %39, %41, %cst_29 {dimension_numbers = #tpu.dot_dimension_numbers<[1], [0], [0], [1], [0, 0, 1, 1], [], []>} : vector<8x32xf32>, vector<32x128xf32>, vector<8x128xf32> -> vector<8x128xf32>
    %cst_30 = arith.constant dense<0.000000e+00> : vector<8x128xf32>
    %44 = tpu.matmul %40, %42, %cst_30 {dimension_numbers = #tpu.dot_dimension_numbers<[1], [0], [0], [1], [0, 0, 1, 1], [], []>} : vector<8x32xf32>, vector<32x128xf32>, vector<8x128xf32> -> vector<8x128xf32>
    %45 = arith.mulf %39, %39 : vector<8x32xf32>
    %cst_31 = arith.constant dense<0.000000e+00> : vector<8xf32>
    %46 = vector.multi_reduction <add>, %45, %cst_31 [1] : vector<8x32xf32> to vector<8xf32>
    %47 = vector.shape_cast %46 : vector<8xf32> to vector<8x1xf32>
    %48 = arith.mulf %41, %41 : vector<32x128xf32>
    %cst_32 = arith.constant dense<0.000000e+00> : vector<128xf32>
    %49 = vector.multi_reduction <add>, %48, %cst_32 [0] : vector<32x128xf32> to vector<128xf32>
    %50 = vector.shape_cast %49 : vector<128xf32> to vector<1x128xf32>
    %51 = vector.broadcast %47 : vector<8x1xf32> to vector<8x128xf32>
    %52 = vector.broadcast %50 : vector<1x128xf32> to vector<8x128xf32>
    %53 = arith.addf %51, %52 : vector<8x128xf32>
    %cst_33 = arith.constant 2.000000e+00 : f32
    %54 = vector.broadcast %cst_33 : f32 to vector<8x128xf32>
    %55 = arith.mulf %54, %43 : vector<8x128xf32>
    %56 = arith.subf %53, %55 : vector<8x128xf32>
    %cst_34 = arith.constant 0.000000e+00 : f32
    %57 = vector.broadcast %cst_34 : f32 to vector<8x128xf32>
    %58 = arith.maximumf %56, %57 : vector<8x128xf32>
    %59 = arith.mulf %40, %40 : vector<8x32xf32>
    %cst_35 = arith.constant dense<0.000000e+00> : vector<8xf32>
    %60 = vector.multi_reduction <add>, %59, %cst_35 [1] : vector<8x32xf32> to vector<8xf32>
    %61 = vector.shape_cast %60 : vector<8xf32> to vector<8x1xf32>
    %62 = arith.mulf %42, %42 : vector<32x128xf32>
    %cst_36 = arith.constant dense<0.000000e+00> : vector<128xf32>
    %63 = vector.multi_reduction <add>, %62, %cst_36 [0] : vector<32x128xf32> to vector<128xf32>
    %64 = vector.shape_cast %63 : vector<128xf32> to vector<1x128xf32>
    %65 = vector.broadcast %61 : vector<8x1xf32> to vector<8x128xf32>
    %66 = vector.broadcast %64 : vector<1x128xf32> to vector<8x128xf32>
    %67 = arith.addf %65, %66 : vector<8x128xf32>
    %cst_37 = arith.constant 2.000000e+00 : f32
    %68 = vector.broadcast %cst_37 : f32 to vector<8x128xf32>
    %69 = arith.mulf %68, %44 : vector<8x128xf32>
    %70 = arith.subf %67, %69 : vector<8x128xf32>
    %cst_38 = arith.constant 0.000000e+00 : f32
    %71 = vector.broadcast %cst_38 : f32 to vector<8x128xf32>
    %72 = arith.maximumf %70, %71 : vector<8x128xf32>
    %73 = math.sqrt %58 : vector<8x128xf32>
    %74 = math.sqrt %72 : vector<8x128xf32>
    %75 = arith.addf %73, %74 : vector<8x128xf32>
    %c0_39 = arith.constant 0 : index
    %c0_40 = arith.constant 0 : index
    %76 = vector.load %arg10[%c0_39, %c0_40] : memref<8x1xi32, #tpu.memory_space<vmem>>, vector<8x1xi32>
    %77 = vector.broadcast %76 : vector<8x1xi32> to vector<8x128xi32>
    %78 = arith.cmpi eq, %12, %77 : vector<8x128xi32>
    %cst_41 = arith.constant 8.000000e-01 : f32
    %79 = vector.broadcast %cst_41 : f32 to vector<8x128xf32>
    %80 = arith.cmpf ogt, %75, %79 : vector<8x128xf32>
    %81 = arith.ori %80, %78 : vector<8x128xi1>
    %82 = arith.andi %81, %14 : vector<8x128xi1>
    %cst_42 = arith.constant 1.000000e+00 : f32
    %cst_43 = arith.constant 0.000000e+00 : f32
    %83 = vector.broadcast %cst_42 : f32 to vector<8x128xf32>
    %84 = vector.broadcast %cst_43 : f32 to vector<8x128xf32>
    %85 = arith.select %82, %83, %84 : vector<8x128xi1>, vector<8x128xf32>
    %c0_44 = arith.constant 0 : index
    %c0_45 = arith.constant 0 : index
    %86 = vector.load %arg13[%c0_44, %c0_45] : memref<8x1xf32, #tpu.memory_space<vmem>>, vector<8x1xf32>
    %87 = arith.mulf %21, %85 : vector<8x128xf32>
    %cst_46 = arith.constant dense<0.000000e+00> : vector<8xf32>
    %88 = vector.multi_reduction <add>, %87, %cst_46 [1] : vector<8x128xf32> to vector<8xf32>
    %89 = vector.shape_cast %88 : vector<8xf32> to vector<8x1xf32>
    %90 = arith.addf %86, %89 : vector<8x1xf32>
    %c0_47 = arith.constant 0 : index
    %c0_48 = arith.constant 0 : index
    %91 = vector.load %arg13[%c0_47, %c0_48] : memref<8x1xf32, #tpu.memory_space<vmem>>, vector<8x1xf32>
    tpu.vector_store %arg13[%c0_47, %c0_48], %90 {strides = array<i32>} : memref<8x1xf32, #tpu.memory_space<vmem>>, vector<8x1xf32>,
    %c0_49 = arith.constant 0 : index
    %c0_50 = arith.constant 0 : index
    %92 = vector.load %arg15[%c0_49, %c0_50] : memref<8x1xf32, #tpu.memory_space<vmem>>, vector<8x1xf32>
    %93 = arith.mulf %26, %85 : vector<8x128xf32>
    %cst_51 = arith.constant dense<0.000000e+00> : vector<8xf32>
    %94 = vector.multi_reduction <add>, %93, %cst_51 [1] : vector<8x128xf32> to vector<8xf32>
    %95 = vector.shape_cast %94 : vector<8xf32> to vector<8x1xf32>
    %96 = arith.addf %92, %95 : vector<8x1xf32>
    %c0_52 = arith.constant 0 : index
    %c0_53 = arith.constant 0 : index
    %97 = vector.load %arg15[%c0_52, %c0_53] : memref<8x1xf32, #tpu.memory_space<vmem>>, vector<8x1xf32>
    tpu.vector_store %arg15[%c0_52, %c0_53], %96 {strides = array<i32>} : memref<8x1xf32, #tpu.memory_space<vmem>>, vector<8x1xf32>,
    %c0_i32_54 = arith.constant 0 : i32
    %98 = arith.cmpi eq, %arg1, %c0_i32_54 : i32
    %99 = arith.extui %98 : i1 to i32
    %c0_i32_55 = arith.constant 0 : i32
    %100 = arith.cmpi ne, %99, %c0_i32_55 : i32
    scf.if %100 {
      %101 = arith.mulf %3, %4 : vector<8x32xf32>
      %cst_56 = arith.constant dense<0.000000e+00> : vector<8xf32>
      %102 = vector.multi_reduction <add>, %101, %cst_56 [1] : vector<8x32xf32> to vector<8xf32>
      %103 = vector.shape_cast %102 : vector<8xf32> to vector<8x1xf32>
      %cst_57 = arith.constant -2.000000e+01 : f32
      %104 = vector.broadcast %cst_57 : f32 to vector<8x1xf32>
      %105 = arith.mulf %104, %103 : vector<8x1xf32>
      %c0_58 = arith.constant 0 : index
      %c0_59 = arith.constant 0 : index
      %106 = vector.load %arg14[%c0_58, %c0_59] : memref<8x1xf32, #tpu.memory_space<vmem>>, vector<8x1xf32>
      %c0_60 = arith.constant 0 : index
      %c0_61 = arith.constant 0 : index
      %107 = vector.load %arg16[%c0_60, %c0_61] : memref<8x1xf32, #tpu.memory_space<vmem>>, vector<8x1xf32>
      %108 = arith.mulf %106, %107 : vector<8x1xf32>
      %109 = math.log %108 : vector<8x1xf32>
      %110 = arith.addf %105, %109 : vector<8x1xf32>
      %c0_62 = arith.constant 0 : index
      %c0_63 = arith.constant 0 : index
      %111 = vector.load %arg12[%c0_62, %c0_63] : memref<8x1xf32, #tpu.memory_space<vmem>>, vector<8x1xf32>
      tpu.vector_store %arg12[%c0_62, %c0_63], %110 {strides = array<i32>} : memref<8x1xf32, #tpu.memory_space<vmem>>, vector<8x1xf32>,
      %c0_64 = arith.constant 0 : index
      %c0_65 = arith.constant 0 : index
      %112 = vector.load %arg13[%c0_64, %c0_65] : memref<8x1xf32, #tpu.memory_space<vmem>>, vector<8x1xf32>
      %c0_66 = arith.constant 0 : index
      %c0_67 = arith.constant 0 : index
      %113 = vector.load %arg15[%c0_66, %c0_67] : memref<8x1xf32, #tpu.memory_space<vmem>>, vector<8x1xf32>
      %114 = arith.mulf %112, %113 : vector<8x1xf32>
      %115 = math.log %114 : vector<8x1xf32>
      %116 = arith.addf %105, %115 : vector<8x1xf32>
      %c0_68 = arith.constant 0 : index
      %c0_69 = arith.constant 0 : index
      %117 = vector.load %arg11[%c0_68, %c0_69] : memref<8x1xf32, #tpu.memory_space<vmem>>, vector<8x1xf32>
      tpu.vector_store %arg11[%c0_68, %c0_69], %116 {strides = array<i32>} : memref<8x1xf32, #tpu.memory_space<vmem>>, vector<8x1xf32>,
    } else {
    }
    return
  }
  func.func @transform_0(%arg0: i32, %arg1: i32) -> (i32, i32) {
    %c0_i32 = arith.constant 0 : i32
    %c0_i32_0 = arith.constant 0 : i32
    return %arg0, %c0_i32 : i32, i32
  }
  func.func @transform_1(%arg0: i32, %arg1: i32) -> (i32, i32) {
    %c0_i32 = arith.constant 0 : i32
    %c0_i32_0 = arith.constant 0 : i32
    return %arg0, %c0_i32 : i32, i32
  }
  func.func @transform_2(%arg0: i32, %arg1: i32) -> (i32, i32) {
    %c0_i32 = arith.constant 0 : i32
    %c0_i32_0 = arith.constant 0 : i32
    return %c0_i32, %arg1 : i32, i32
  }
  func.func @transform_3(%arg0: i32, %arg1: i32) -> (i32, i32) {
    %c0_i32 = arith.constant 0 : i32
    %c0_i32_0 = arith.constant 0 : i32
    return %c0_i32, %arg1 : i32, i32
  }
  func.func @transform_4(%arg0: i32, %arg1: i32) -> (i32, i32) {
    %c0_i32 = arith.constant 0 : i32
    %c0_i32_0 = arith.constant 0 : i32
    return %arg0, %c0_i32 : i32, i32
  }
  func.func @transform_5(%arg0: i32, %arg1: i32) -> (i32, i32) {
    %c0_i32 = arith.constant 0 : i32
    %c0_i32_0 = arith.constant 0 : i32
    return %arg0, %c0_i32 : i32, i32
  }
  func.func @transform_6(%arg0: i32, %arg1: i32) -> (i32, i32) {
    %c0_i32 = arith.constant 0 : i32
    %c0_i32_0 = arith.constant 0 : i32
    return %c0_i32, %arg1 : i32, i32
  }
  func.func @transform_7(%arg0: i32, %arg1: i32) -> (i32, i32) {
    %c0_i32 = arith.constant 0 : i32
    %c0_i32_0 = arith.constant 0 : i32
    return %c0_i32, %arg1 : i32, i32
  }
  func.func @transform_8(%arg0: i32, %arg1: i32) -> (i32, i32) {
    %c0_i32 = arith.constant 0 : i32
    %c0_i32_0 = arith.constant 0 : i32
    return %arg0, %c0_i32 : i32, i32
  }
  func.func @transform_9(%arg0: i32, %arg1: i32) -> (i32, i32) {
    %c0_i32 = arith.constant 0 : i32
    %c0_i32_0 = arith.constant 0 : i32
    return %arg0, %c0_i32 : i32, i32
  }
  func.func @transform_10(%arg0: i32, %arg1: i32) -> (i32, i32) {
    %c0_i32 = arith.constant 0 : i32
    %c0_i32_0 = arith.constant 0 : i32
    return %arg0, %c0_i32 : i32, i32
  }
}

module attributes {stable_mosaic.version = 11 : i64} {
  func.func @_ssl_fused_kernel(%arg0: i32, %arg1: i32, %arg2: memref<8x32xf32, #tpu.memory_space<vmem>>, %arg3: memref<8x32xf32, #tpu.memory_space<vmem>>, %arg4: memref<32x128xf32, #tpu.memory_space<vmem>>, %arg5: memref<32x128xf32, #tpu.memory_space<vmem>>, %arg6: memref<8x1xf32, #tpu.memory_space<vmem>>, %arg7: memref<8x1xf32, #tpu.memory_space<vmem>>, %arg8: memref<8x1xf32, #tpu.memory_space<vmem>>) attributes {dimension_semantics = [#tpu.dimension_semantics<parallel>, #tpu.dimension_semantics<arbitrary>], iteration_bounds = array<i64: 1, 1>, scalar_prefetch = 0 : i64, scratch_operands = 2 : i64, tpu.core_type = #tpu.core_type<tc>, window_params = [{transform_indices = @transform_0, window_bounds = array<i64: 8, 32>}, {transform_indices = @transform_1, window_bounds = array<i64: 8, 32>}, {transform_indices = @transform_2, window_bounds = array<i64: 32, 128>}, {transform_indices = @transform_3, window_bounds = array<i64: 32, 128>}, {transform_indices = @transform_4, window_bounds = array<i64: 8, 1>}]} {
    %c0_i32 = arith.constant 0 : i32
    %0 = arith.cmpi eq, %arg1, %c0_i32 : i32
    %1 = arith.extui %0 : i1 to i32
    %c0_i32_0 = arith.constant 0 : i32
    %2 = arith.cmpi ne, %1, %c0_i32_0 : i32
    scf.if %2 {
      %cst_23 = arith.constant 0.000000e+00 : f32
      %42 = vector.broadcast %cst_23 : f32 to vector<8x1xf32>
      %c0_24 = arith.constant 0 : index
      %c0_25 = arith.constant 0 : index
      %43 = vector.load %arg7[%c0_24, %c0_25] : memref<8x1xf32, #tpu.memory_space<vmem>>, vector<8x1xf32>
      tpu.vector_store %arg7[%c0_24, %c0_25], %42 {strides = array<i32>} : memref<8x1xf32, #tpu.memory_space<vmem>>, vector<8x1xf32>,
      %cst_26 = arith.constant 0.000000e+00 : f32
      %44 = vector.broadcast %cst_26 : f32 to vector<8x1xf32>
      %c0_27 = arith.constant 0 : index
      %c0_28 = arith.constant 0 : index
      %45 = vector.load %arg8[%c0_27, %c0_28] : memref<8x1xf32, #tpu.memory_space<vmem>>, vector<8x1xf32>
      tpu.vector_store %arg8[%c0_27, %c0_28], %44 {strides = array<i32>} : memref<8x1xf32, #tpu.memory_space<vmem>>, vector<8x1xf32>,
    } else {
    }
    %c0 = arith.constant 0 : index
    %c0_1 = arith.constant 0 : index
    %3 = vector.load %arg2[%c0, %c0_1] : memref<8x32xf32, #tpu.memory_space<vmem>>, vector<8x32xf32>
    %c0_2 = arith.constant 0 : index
    %c0_3 = arith.constant 0 : index
    %4 = vector.load %arg3[%c0_2, %c0_3] : memref<8x32xf32, #tpu.memory_space<vmem>>, vector<8x32xf32>
    %c0_4 = arith.constant 0 : index
    %c0_5 = arith.constant 0 : index
    %5 = vector.load %arg4[%c0_4, %c0_5] : memref<32x128xf32, #tpu.memory_space<vmem>>, vector<32x128xf32>
    %cst = arith.constant dense<0.000000e+00> : vector<8x128xf32>
    %6 = tpu.matmul %3, %5, %cst {dimension_numbers = #tpu.dot_dimension_numbers<[1], [0], [0], [1], [0, 0, 1, 1], [], []>} : vector<8x32xf32>, vector<32x128xf32>, vector<8x128xf32> -> vector<8x128xf32>
    %c0_6 = arith.constant 0 : index
    %c0_7 = arith.constant 0 : index
    %7 = vector.load %arg5[%c0_6, %c0_7] : memref<32x128xf32, #tpu.memory_space<vmem>>, vector<32x128xf32>
    %cst_8 = arith.constant dense<0.000000e+00> : vector<8x128xf32>
    %8 = tpu.matmul %4, %7, %cst_8 {dimension_numbers = #tpu.dot_dimension_numbers<[1], [0], [0], [1], [0, 0, 1, 1], [], []>} : vector<8x32xf32>, vector<32x128xf32>, vector<8x128xf32> -> vector<8x128xf32>
    %9 = tpu.iota {dimensions = array<i32: 1>} : vector<8x128xi32>
    %c128_i32 = arith.constant 128 : i32
    %10 = arith.muli %arg1, %c128_i32 : i32
    %11 = vector.broadcast %10 : i32 to vector<8x128xi32>
    %12 = arith.addi %9, %11 : vector<8x128xi32>
    %c8_i32 = arith.constant 8 : i32
    %13 = vector.broadcast %c8_i32 : i32 to vector<8x128xi32>
    %14 = arith.cmpi slt, %12, %13 : vector<8x128xi32>
    %15 = arith.extui %14 : vector<8x128xi1> to vector<8x128xi32>
    %16 = arith.sitofp %15 : vector<8x128xi32> to vector<8x128xf32>
    %cst_9 = arith.constant 1.000000e+01 : f32
    %17 = vector.broadcast %cst_9 : f32 to vector<8x128xf32>
    %18 = arith.mulf %6, %17 : vector<8x128xf32>
    %19 = arith.truncf %18 : vector<8x128xf32> to vector<8x128xbf16>
    %20 = math.exp %19 : vector<8x128xbf16>
    %21 = arith.extf %20 : vector<8x128xbf16> to vector<8x128xf32>
    %cst_10 = arith.constant 1.000000e+01 : f32
    %22 = vector.broadcast %cst_10 : f32 to vector<8x128xf32>
    %23 = arith.mulf %8, %22 : vector<8x128xf32>
    %24 = arith.truncf %23 : vector<8x128xf32> to vector<8x128xbf16>
    %25 = math.exp %24 : vector<8x128xbf16>
    %26 = arith.extf %25 : vector<8x128xbf16> to vector<8x128xf32>
    %c0_11 = arith.constant 0 : index
    %c0_12 = arith.constant 0 : index
    %27 = vector.load %arg7[%c0_11, %c0_12] : memref<8x1xf32, #tpu.memory_space<vmem>>, vector<8x1xf32>
    %28 = arith.mulf %21, %16 : vector<8x128xf32>
    %cst_13 = arith.constant dense<0.000000e+00> : vector<8xf32>
    %29 = vector.multi_reduction <add>, %28, %cst_13 [1] : vector<8x128xf32> to vector<8xf32>
    %30 = vector.shape_cast %29 : vector<8xf32> to vector<8x1xf32>
    %31 = arith.addf %27, %30 : vector<8x1xf32>
    %c0_14 = arith.constant 0 : index
    %c0_15 = arith.constant 0 : index
    %32 = vector.load %arg7[%c0_14, %c0_15] : memref<8x1xf32, #tpu.memory_space<vmem>>, vector<8x1xf32>
    tpu.vector_store %arg7[%c0_14, %c0_15], %31 {strides = array<i32>} : memref<8x1xf32, #tpu.memory_space<vmem>>, vector<8x1xf32>,
    %c0_16 = arith.constant 0 : index
    %c0_17 = arith.constant 0 : index
    %33 = vector.load %arg8[%c0_16, %c0_17] : memref<8x1xf32, #tpu.memory_space<vmem>>, vector<8x1xf32>
    %34 = arith.mulf %26, %16 : vector<8x128xf32>
    %cst_18 = arith.constant dense<0.000000e+00> : vector<8xf32>
    %35 = vector.multi_reduction <add>, %34, %cst_18 [1] : vector<8x128xf32> to vector<8xf32>
    %36 = vector.shape_cast %35 : vector<8xf32> to vector<8x1xf32>
    %37 = arith.addf %33, %36 : vector<8x1xf32>
    %c0_19 = arith.constant 0 : index
    %c0_20 = arith.constant 0 : index
    %38 = vector.load %arg8[%c0_19, %c0_20] : memref<8x1xf32, #tpu.memory_space<vmem>>, vector<8x1xf32>
    tpu.vector_store %arg8[%c0_19, %c0_20], %37 {strides = array<i32>} : memref<8x1xf32, #tpu.memory_space<vmem>>, vector<8x1xf32>,
    %c0_i32_21 = arith.constant 0 : i32
    %39 = arith.cmpi eq, %arg1, %c0_i32_21 : i32
    %40 = arith.extui %39 : i1 to i32
    %c0_i32_22 = arith.constant 0 : i32
    %41 = arith.cmpi ne, %40, %c0_i32_22 : i32
    scf.if %41 {
      %42 = arith.mulf %3, %4 : vector<8x32xf32>
      %cst_23 = arith.constant dense<0.000000e+00> : vector<8xf32>
      %43 = vector.multi_reduction <add>, %42, %cst_23 [1] : vector<8x32xf32> to vector<8xf32>
      %44 = vector.shape_cast %43 : vector<8xf32> to vector<8x1xf32>
      %cst_24 = arith.constant -2.000000e+01 : f32
      %45 = vector.broadcast %cst_24 : f32 to vector<8x1xf32>
      %46 = arith.mulf %45, %44 : vector<8x1xf32>
      %c0_25 = arith.constant 0 : index
      %c0_26 = arith.constant 0 : index
      %47 = vector.load %arg7[%c0_25, %c0_26] : memref<8x1xf32, #tpu.memory_space<vmem>>, vector<8x1xf32>
      %c0_27 = arith.constant 0 : index
      %c0_28 = arith.constant 0 : index
      %48 = vector.load %arg8[%c0_27, %c0_28] : memref<8x1xf32, #tpu.memory_space<vmem>>, vector<8x1xf32>
      %49 = arith.mulf %47, %48 : vector<8x1xf32>
      %50 = math.log %49 : vector<8x1xf32>
      %51 = arith.addf %46, %50 : vector<8x1xf32>
      %c0_29 = arith.constant 0 : index
      %c0_30 = arith.constant 0 : index
      %52 = vector.load %arg6[%c0_29, %c0_30] : memref<8x1xf32, #tpu.memory_space<vmem>>, vector<8x1xf32>
      tpu.vector_store %arg6[%c0_29, %c0_30], %51 {strides = array<i32>} : memref<8x1xf32, #tpu.memory_space<vmem>>, vector<8x1xf32>,
    } else {
    }
    return
  }
  func.func @transform_0(%arg0: i32, %arg1: i32) -> (i32, i32) {
    %c0_i32 = arith.constant 0 : i32
    %c0_i32_0 = arith.constant 0 : i32
    return %arg0, %c0_i32 : i32, i32
  }
  func.func @transform_1(%arg0: i32, %arg1: i32) -> (i32, i32) {
    %c0_i32 = arith.constant 0 : i32
    %c0_i32_0 = arith.constant 0 : i32
    return %arg0, %c0_i32 : i32, i32
  }
  func.func @transform_2(%arg0: i32, %arg1: i32) -> (i32, i32) {
    %c0_i32 = arith.constant 0 : i32
    %c0_i32_0 = arith.constant 0 : i32
    return %c0_i32, %arg1 : i32, i32
  }
  func.func @transform_3(%arg0: i32, %arg1: i32) -> (i32, i32) {
    %c0_i32 = arith.constant 0 : i32
    %c0_i32_0 = arith.constant 0 : i32
    return %c0_i32, %arg1 : i32, i32
  }
  func.func @transform_4(%arg0: i32, %arg1: i32) -> (i32, i32) {
    %c0_i32 = arith.constant 0 : i32
    %c0_i32_0 = arith.constant 0 : i32
    return %arg0, %c0_i32 : i32, i32
  }
}

</mosaic_0001>

<bundles_post_ra>
// kernel: ci4gi_forward.9
= control target key start
LH: loop header
LB: loop body
LE: loop exit
PB: predicated region body
PF: predicated region fallthrough
CT: control target
= control target key end

     0   :  { %v197_v0 = vmov 0.0   ;;  %vm198_vm0 = vmmov 0   ;;  %s247_s1 = inlined_call_operand.vmem [shape: bf16[128,128], index: 1, kind: input, shape index: {}]   ;;  %s248_s0 = inlined_call_operand.vmem [shape: bf16[16,128], index: 0, kind: input, shape index: {}]   ;;  %s249_s2 = inlined_call_operand.vmem [shape: f32[16,128], index: 2, kind: output, shape index: {}]  }
   0x1   :  { %166 = vmatprep.subr.bf16.mxu0 %v197_v0  ;;  %v188_v1 = vld [vmem:[%s247_s1] sm:$0xff]   ;;  %182 = vmatprep.mubr.msk.bf16.mxu0 %vm198_vm0, %v197_v0  ;;  %v189_v2 = vld [vmem:[%s247_s1 + $0x8] sm:$0xff]   ;;  %v190_v3 = vld [vmem:[%s247_s1 + $0x10] sm:$0xff]  }
   0x2   :  { %167 = vmatpush3.bf16.msra.mxu0 %v188_v1  ;;  %v191_v4 = vld [vmem:[%s247_s1 + $0x18] sm:$0xff]   ;;  %v192_v5 = vld [vmem:[%s247_s1 + $0x20] sm:$0xff]   ;;  %v193_v6 = vld [vmem:[%s247_s1 + $0x28] sm:$0xff]  }
   0x3   :  { %168 = vmatprep.subr.bf16.mxu0 %v197_v0  ;;  %v194_v7 = vld [vmem:[%s247_s1 + $0x30] sm:$0xff]   ;;  %v195_v8 = vld [vmem:[%s247_s1 + $0x38] sm:$0xff]   ;;  %v196_v9 = vld [vmem:[%s248_s0] sm:$0xff]  }
   0x6   :  { %169 = vmatpush3.bf16.msra.mxu0 %v189_v2 }
   0x7   :  { %170 = vmatprep.subr.bf16.mxu0 %v197_v0 }
   0xa   :  { %171 = vmatpush3.bf16.msra.mxu0 %v190_v3 }
   0xb   :  { %172 = vmatprep.subr.bf16.mxu0 %v197_v0 }
   0xe   :  { %173 = vmatpush3.bf16.msra.mxu0 %v191_v4 }
   0xf   :  { %174 = vmatprep.subr.bf16.mxu0 %v197_v0 }
  0x12   :  { %175 = vmatpush3.bf16.msra.mxu0 %v192_v5 }
  0x13   :  { %176 = vmatprep.subr.bf16.mxu0 %v197_v0 }
  0x16   :  { %177 = vmatpush3.bf16.msra.mxu0 %v193_v6 }
  0x17   :  { %178 = vmatprep.subr.bf16.mxu0 %v197_v0 }
  0x1a   :  { %179 = vmatpush3.bf16.msra.mxu0 %v194_v7 }
  0x1b   :  { %180 = vmatprep.subr.bf16.mxu0 %v197_v0 }
  0x1e   :  { %181 = vmatpush3.bf16.msra.mxu0 %v195_v8 }
  0x21   :  { %183 = vmatmul.mubr.bf16.vlgmr.msra.gmra.mrb[0].mxu0 %v196_v9 }
  0xf4   :  { %v126_v10 = vpop.f32.mrb[0].mxu0 }
  0xf5   :  { %142 = vst [vmem:[%s249_s2] sm:$0xff] %v126_v10  ;;  %v184_v11 = vpop.f32.mrb[1].mxu0 }
  0xf6   :  { %v129_v12 = vpop.f32.mrb[2].mxu0 }
  0xf7   :  { %143 = vst [vmem:[%s249_s2 + $0x8] sm:$0xff] %v129_v12  ;;  %v185_v13 = vpop.f32.mrb[3].mxu0 }

// kernel: ci4gi_forward.7
= control target key start
LH: loop header
LB: loop body
LE: loop exit
PB: predicated region body
PF: predicated region fallthrough
CT: control target
= control target key end

     0   :  { %s283_s1 = inlined_call_operand.vmem [shape: bf16[128,128], index: 1, kind: input, shape index: {}]   ;;  %s284_s0 = inlined_call_operand.vmem [shape: bf16[32,128], index: 0, kind: input, shape index: {}]   ;;  %s285_s2 = inlined_call_operand.vmem [shape: f32[32,128], index: 2, kind: output, shape index: {}]  }
   0x1   :  { %v216_v0 = vld [vmem:[%s283_s1] sm:$0xff]   ;;  %v217_v1 = vld [vmem:[%s283_s1 + $0x8] sm:$0xff]   ;;  %v218_v2 = vld [vmem:[%s283_s1 + $0x10] sm:$0xff]  }
   0x2   :  { %196 = vmatprep.subr.bf16.mxu0 %v216_v0  ;;  %v219_v3 = vld [vmem:[%s283_s1 + $0x18] sm:$0xff]   ;;  %v224_v4 = vld [vmem:[%s284_s0] sm:$0xff]   ;;  %v221_v6 = vld [vmem:[%s283_s1 + $0x28] sm:$0xff]  }
   0x3   :  { %197 = vmatpush3.bf16.msra.mxu0 %v216_v0  ;;  %212 = vmatprep.mubr.bf16.mxu0 %v224_v4  ;;  %v220_v5 = vld [vmem:[%s283_s1 + $0x20] sm:$0xff]   ;;  %v222_v7 = vld [vmem:[%s283_s1 + $0x30] sm:$0xff]   ;;  %v223_v8 = vld [vmem:[%s283_s1 + $0x38] sm:$0xff]  }
   0x4   :  { %198 = vmatprep.subr.bf16.mxu0 %v217_v1  ;;  %v225_v9 = vld [vmem:[%s284_s0 + $0x8] sm:$0xff]  }
   0x7   :  { %199 = vmatpush3.bf16.msra.mxu0 %v217_v1 }
   0x8   :  { %200 = vmatprep.subr.bf16.mxu0 %v218_v2 }
   0xb   :  { %201 = vmatpush3.bf16.msra.mxu0 %v218_v2 }
   0xc   :  { %202 = vmatprep.subr.bf16.mxu0 %v219_v3 }
   0xf   :  { %203 = vmatpush3.bf16.msra.mxu0 %v219_v3 }
  0x10   :  { %204 = vmatprep.subr.bf16.mxu0 %v220_v5 }
  0x13   :  { %205 = vmatpush3.bf16.msra.mxu0 %v220_v5 }
  0x14   :  { %206 = vmatprep.subr.bf16.mxu0 %v221_v6 }
  0x17   :  { %207 = vmatpush3.bf16.msra.mxu0 %v221_v6 }
  0x18   :  { %208 = vmatprep.subr.bf16.mxu0 %v222_v7 }
  0x1b   :  { %209 = vmatpush3.bf16.msra.mxu0 %v222_v7 }
  0x1c   :  { %210 = vmatprep.subr.bf16.mxu0 %v223_v8 }
  0x1f   :  { %211 = vmatpush3.bf16.msra.mxu0 %v223_v8 }
  0x22   :  { %213 = vmatmul.mubr.bf16.vlgmr.msra.gmra.mrb[0].mxu0 %v225_v9 }
  0xf5   :  { %v214_v10 = vpop.f32.mrb[0].mxu0 }
  0xf6   :  { %170 = vst [vmem:[%s285_s2 + $0x10] sm:$0xff] %v214_v10  ;;  %v138_v11 = vpop.f32.mrb[1].mxu0 }
  0xf7   :  { %168 = vst [vmem:[%s285_s2] sm:$0xff] %v138_v11  ;;  %v215_v12 = vpop.f32.mrb[2].mxu0 }
  0xf8   :  { %171 = vst [vmem:[%s285_s2 + $0x18] sm:$0xff] %v215_v12  ;;  %v141_v13 = vpop.f32.mrb[3].mxu0 }
  0xf9   :  { %169 = vst [vmem:[%s285_s2 + $0x8] sm:$0xff] %v141_v13 }

// kernel: ci4gi_forward.10
= control target key start
LH: loop header
LB: loop body
LE: loop exit
PB: predicated region body
PF: predicated region fallthrough
CT: control target
= control target key end

     0   :  { %v214_v0 = vmov 0.0|0.0   ;;  %vm215_vm0 = vmmov 0   ;;  %v216_v4 = vmov 0.0   ;;  %s289_s1 = inlined_call_operand.vmem [shape: f32[128,128], index: 1, kind: input, shape index: {}]   ;;  %s290_s0 = inlined_call_operand.vmem [shape: bf16[16,128], index: 0, kind: input, shape index: {}]   ;;  %s291_s2 = inlined_call_operand.vmem [shape: f32[16,128], index: 2, kind: output, shape index: {}]  }
   0x1   :  { %186 = vmatprep.subr.bf16.mxu0 %v214_v0  ;;  %v22_v1 = vld [vmem:[%s289_s1] sm:$0xff]  ;;  %v23_v2 = vld [vmem:[%s289_s1 + $0x8] sm:$0xff]  ;;  %v24_v3 = vld [vmem:[%s289_s1 + $0x10] sm:$0xff]  ;;  %182 = vmatprep.mubr.msk.bf16.mxu0 %vm215_vm0, %v216_v4 }
   0x2   :  { %v187_v5 = vpack.c.bf16 %v23_v2, %v22_v1  ;;  %v25_v6 = vld [vmem:[%s289_s1 + $0x18] sm:$0xff]  ;;  %v26_v8 = vld [vmem:[%s289_s1 + $0x20] sm:$0xff]  ;;  %v27_v9 = vld [vmem:[%s289_s1 + $0x28] sm:$0xff] }
   0x3   :  { %v190_v7 = vpack.c.bf16 %v25_v6, %v24_v3  ;;  %v193_v10 = vpack.c.bf16 %v27_v9, %v26_v8  ;;  %v28_v11 = vld [vmem:[%s289_s1 + $0x30] sm:$0xff]  ;;  %v29_v12 = vld [vmem:[%s289_s1 + $0x38] sm:$0xff]  ;;  %v30_v14 = vld [vmem:[%s289_s1 + $0x40] sm:$0xff] }
   0x4   :  { %188 = vmatpush3.bf16.msra.mxu0 %v187_v5  ;;  %v196_v13 = vpack.c.bf16 %v29_v12, %v28_v11  ;;  %v31_v15 = vld [vmem:[%s289_s1 + $0x48] sm:$0xff]  ;;  %v32_v17 = vld [vmem:[%s289_s1 + $0x50] sm:$0xff]  ;;  %v33_v18 = vld [vmem:[%s289_s1 + $0x58] sm:$0xff] }
   0x5   :  { %189 = vmatprep.subr.bf16.mxu0 %v214_v0  ;;  %v199_v16 = vpack.c.bf16 %v31_v15, %v30_v14  ;;  %v202_v19 = vpack.c.bf16 %v33_v18, %v32_v17  ;;  %v34_v20 = vld [vmem:[%s289_s1 + $0x60] sm:$0xff]  ;;  %v35_v21 = vld [vmem:[%s289_s1 + $0x68] sm:$0xff]  ;;  %v36_v23 = vld [vmem:[%s289_s1 + $0x70] sm:$0xff] }
   0x6   :  { %v205_v22 = vpack.c.bf16 %v35_v21, %v34_v20  ;;  %v37_v24 = vld [vmem:[%s289_s1 + $0x78] sm:$0xff]  ;;  %v213_v26 = vld [vmem:[%s290_s0] sm:$0xff]  }
   0x7   :  { %v208_v25 = vpack.c.bf16 %v37_v24, %v36_v23 }
   0x8   :  { %191 = vmatpush3.bf16.msra.mxu0 %v190_v7 }
   0x9   :  { %192 = vmatprep.subr.bf16.mxu0 %v214_v0 }
   0xc   :  { %194 = vmatpush3.bf16.msra.mxu0 %v193_v10 }
   0xd   :  { %195 = vmatprep.subr.bf16.mxu0 %v214_v0 }
  0x10   :  { %197 = vmatpush3.bf16.msra.mxu0 %v196_v13 }
  0x11   :  { %198 = vmatprep.subr.bf16.mxu0 %v214_v0 }
  0x14   :  { %200 = vmatpush3.bf16.msra.mxu0 %v199_v16 }
  0x15   :  { %201 = vmatprep.subr.bf16.mxu0 %v214_v0 }
  0x18   :  { %203 = vmatpush3.bf16.msra.mxu0 %v202_v19 }
  0x19   :  { %204 = vmatprep.subr.bf16.mxu0 %v214_v0 }
  0x1c   :  { %206 = vmatpush3.bf16.msra.mxu0 %v205_v22 }
  0x1d   :  { %207 = vmatprep.subr.bf16.mxu0 %v214_v0 }
  0x20   :  { %209 = vmatpush3.bf16.msra.mxu0 %v208_v25 }
  0x23   :  { %183 = vmatmul.mubr.bf16.vlgmr.msra.gmra.mrb[0].mxu0 %v213_v26 }
  0xf6   :  { %v110_v27 = vpop.f32.mrb[0].mxu0 }
  0xf7   :  { %126 = vst [vmem:[%s291_s2] sm:$0xff] %v110_v27  ;;  %v184_v28 = vpop.f32.mrb[1].mxu0 }
  0xf8   :  { %v113_v29 = vpop.f32.mrb[2].mxu0 }
  0xf9   :  { %127 = vst [vmem:[%s291_s2 + $0x8] sm:$0xff] %v113_v29  ;;  %v185_v30 = vpop.f32.mrb[3].mxu0 }

// kernel: ci4gi_forward.11
= control target key start
LH: loop header
LB: loop body
LE: loop exit
PB: predicated region body
PF: predicated region fallthrough
CT: control target
= control target key end

     0   :  { %s287_s1 = inlined_call_operand.vmem [shape: f32[128,128], index: 1, kind: input, shape index: {}]   ;;  %s288_s0 = inlined_call_operand.vmem [shape: f32[16,128], index: 0, kind: input, shape index: {}]   ;;  %s289_s2 = inlined_call_operand.vmem [shape: f32[16,128], index: 2, kind: output, shape index: {}]  }
   0x1   :  { %v21_v0 = vld [vmem:[%s287_s1] sm:$0xff]  ;;  %v22_v1 = vld [vmem:[%s287_s1 + $0x8] sm:$0xff]  ;;  %v23_v2 = vld [vmem:[%s287_s1 + $0x10] sm:$0xff] }
   0x2   :  { %v180_v3 = vpack.c.bf16 %v22_v1, %v21_v0  ;;  %v24_v4 = vld [vmem:[%s287_s1 + $0x18] sm:$0xff]  ;;  %v25_v6 = vld [vmem:[%s287_s1 + $0x20] sm:$0xff]  ;;  %v26_v7 = vld [vmem:[%s287_s1 + $0x28] sm:$0xff] }
   0x3   :  { %v184_v5 = vpack.c.bf16 %v24_v4, %v23_v2  ;;  %v188_v8 = vpack.c.bf16 %v26_v7, %v25_v6  ;;  %v19_v9 = vld [vmem:[%s288_s0] sm:$0xff]  ;;  %v27_v10 = vld [vmem:[%s287_s1 + $0x30] sm:$0xff]  ;;  %v28_v11 = vld [vmem:[%s287_s1 + $0x38] sm:$0xff] }
   0x4   :  { %181 = vmatprep.subr.bf16.mxu0 %v180_v3  ;;  %177 = vmatprep.mubr.f32.mxu0 %v19_v9  ;;  %v192_v12 = vpack.c.bf16 %v28_v11, %v27_v10  ;;  %v29_v13 = vld [vmem:[%s287_s1 + $0x40] sm:$0xff]  ;;  %v30_v14 = vld [vmem:[%s287_s1 + $0x48] sm:$0xff]  ;;  %v31_v16 = vld [vmem:[%s287_s1 + $0x50] sm:$0xff] }
   0x5   :  { %183 = vmatpush3.bf16.msra.mxu0 %v180_v3  ;;  %v196_v15 = vpack.c.bf16 %v30_v14, %v29_v13  ;;  %v32_v17 = vld [vmem:[%s287_s1 + $0x58] sm:$0xff]  ;;  %v33_v19 = vld [vmem:[%s287_s1 + $0x60] sm:$0xff]  ;;  %v34_v20 = vld [vmem:[%s287_s1 + $0x68] sm:$0xff] }
   0x6   :  { %185 = vmatprep.subr.bf16.mxu0 %v184_v5  ;;  %v200_v18 = vpack.c.bf16 %v32_v17, %v31_v16  ;;  %v204_v21 = vpack.c.bf16 %v34_v20, %v33_v19  ;;  %v35_v22 = vld [vmem:[%s287_s1 + $0x70] sm:$0xff]  ;;  %v36_v23 = vld [vmem:[%s287_s1 + $0x78] sm:$0xff]  ;;  %v20_v25 = vld [vmem:[%s288_s0 + $0x8] sm:$0xff] }
   0x7   :  { %v208_v24 = vpack.c.bf16 %v36_v23, %v35_v22 }
   0x9   :  { %187 = vmatpush3.bf16.msra.mxu0 %v184_v5 }
   0xa   :  { %189 = vmatprep.subr.bf16.mxu0 %v188_v8 }
   0xd   :  { %191 = vmatpush3.bf16.msra.mxu0 %v188_v8 }
   0xe   :  { %193 = vmatprep.subr.bf16.mxu0 %v192_v12 }
  0x11   :  { %195 = vmatpush3.bf16.msra.mxu0 %v192_v12 }
  0x12   :  { %197 = vmatprep.subr.bf16.mxu0 %v196_v15 }
  0x15   :  { %199 = vmatpush3.bf16.msra.mxu0 %v196_v15 }
  0x16   :  { %201 = vmatprep.subr.bf16.mxu0 %v200_v18 }
  0x19   :  { %203 = vmatpush3.bf16.msra.mxu0 %v200_v18 }
  0x1a   :  { %205 = vmatprep.subr.bf16.mxu0 %v204_v21 }
  0x1d   :  { %207 = vmatpush3.bf16.msra.mxu0 %v204_v21 }
  0x1e   :  { %209 = vmatprep.subr.bf16.mxu0 %v208_v24 }
  0x21   :  { %211 = vmatpush3.bf16.msra.mxu0 %v208_v24 }
  0x24   :  { %178 = vmatmul.mubr.f32.vlgmr.msra.gmra.mrb[0].mxu0 %v20_v25 }
  0xf7   :  { %v179_v26 = vpop.f32.mrb[0].mxu0 }
  0xf8   :  { %122 = vst [vmem:[%s289_s2 + $0x8] sm:$0xff] %v179_v26  ;;  %v103_v27 = vpop.f32.mrb[1].mxu0 }
  0xf9   :  { %121 = vst [vmem:[%s289_s2] sm:$0xff] %v103_v27 }

// kernel: ci4gi_forward.12
= control target key start
LH: loop header
LB: loop body
LE: loop exit
PB: predicated region body
PF: predicated region fallthrough
CT: control target
= control target key end

     0   :  { %v608_v0 = vmov 0.0|0.0   ;;  %vm609_vm0 = vmmov 0   ;;  %v610_v8 = vmov 0.0   ;;  %v611_v12 = vmov 0   ;;  %s785_s2 = inlined_call_operand.vmem [shape: f32[32,128], index: 2, kind: input, shape index: {}]   ;;  %s786_s3 = inlined_call_operand.vmem [shape: f32[32,128], index: 3, kind: input, shape index: {}]   ;;  %s787_s6 = inlined_call_operand.vmem [shape: f32[32,128], index: 6, kind: input, shape index: {}]   ;;  %s788_s7 = inlined_call_operand.vmem [shape: f32[32,128], index: 7, kind: input, shape index: {}]   ;;  %s789_s4 = inlined_call_operand.vmem [shape: f32[8,32], index: 4, kind: input, shape index: {}]   ;;  %s790_s8 = inlined_call_operand.vmem [shape: s32[8,1], index: 8, kind: input, shape index: {}]   ;;  %s791_s0 = inlined_call_operand.vmem [shape: f32[8,32], index: 0, kind: input, shape index: {}]   ;;  %s792_s5 = inlined_call_operand.vmem [shape: f32[8,32], index: 5, kind: input, shape index: {}]   ;;  %s793_s1 = inlined_call_operand.vmem [shape: f32[8,32], index: 1, kind: input, shape index: {}]   ;;  %s794_s10 = inlined_call_operand.vmem [shape: f32[8,1], index: 10, kind: output, shape index: {1}]   ;;  %s795_s9 = inlined_call_operand.vmem [shape: f32[8,1], index: 9, kind: output, shape index: {0}]  }
   0x1   :  { %566 = vmatprep.subr.bf16.mxu0 %v608_v0  ;;  %572 = vmatprep.subr.bf16.mxu1 %v608_v0  ;;  %v45_v1 = vld [vmem:[%s785_s2] sm:$0xff]  ;;  %v46_v2 = vld [vmem:[%s785_s2 + $0x8] sm:$0xff]  ;;  %v47_v6 = vld [vmem:[%s785_s2 + $0x10] sm:$0xff]  ;;  %vm49_vm1 = vcmask 261120   ;;  %vm38_vm2 = vcmask 7168  }
   0x2   :  { %v123_v3 = vld [vmem:[%s786_s3] sm:$0xff]  ;;  %v567_v4 = vpack.c.bf16 %v46_v2, %v45_v1  ;;  %v124_v5 = vld [vmem:[%s786_s3 + $0x8] sm:$0xff]  ;;  %v48_v7 = vld [vmem:[%s785_s2 + $0x18] sm:$0xff]  ;;  %530 = vmatprep.mubr.msk.f32.mxu0 %vm609_vm0, %v610_v8  ;;  %541 = vmatprep.mubr.msk.f32.mxu1 %vm609_vm0, %v610_v8  ;;  %40 = vst.msk [vmem:[#allocation5] sm:$0xff] %vm38_vm2, %v610_v8 }
   0x3   :  { %v573_v9 = vpack.c.bf16 %v124_v5, %v123_v3  ;;  %v125_v10 = vld [vmem:[%s786_s3 + $0x10] sm:$0xff]  ;;  %v126_v11 = vld [vmem:[%s786_s3 + $0x18] sm:$0xff]  ;;  %594 = vset.pattern.permute.xlu1 %v611_v12  ;;  %595 = vset.pattern.permute.xlu0 %v611_v12  ;;  %v570_v13 = vpack.c.bf16 %v48_v7, %v47_v6  ;;  %v235_v14 = vld [vmem:[%s787_s6] sm:$0xff]  ;;  %39 = vst.msk [vmem:[#allocation3] sm:$0xff] %vm38_vm2, %v610_v8 }
   0x4   :  { %568 = vmatpush3.bf16.msra.mxu0 %v567_v4  ;;  %v236_v15 = vld [vmem:[%s787_s6 + $0x8] sm:$0xff]  ;;  %v576_v16 = vpack.c.bf16 %v126_v11, %v125_v10  ;;  %v393_v17 = vmul.f32 %v235_v14, %v235_v14  ;;  %v239_v19 = vld [vmem:[%s788_s7] sm:$0xff]  ;;  %v237_v33 = vld [vmem:[%s787_s6 + $0x10] sm:$0xff]  ;;  %41 = vst.msk [vmem:[#allocation2] sm:$0xff] %vm38_vm2, %v610_v8  ;;  %v200_v11 = vlaneseq }
   0x5   :  { %574 = vmatpush3.bf16.msra.mxu1 %v573_v9  ;;  %569 = vmatprep.subr.bf16.mxu0 %v608_v0  ;;  %v394_v18 = vmul.f32 %v236_v15, %v236_v15  ;;  %v240_v20 = vld [vmem:[%s788_s7 + $0x8] sm:$0xff]  ;;  %v414_v21 = vmul.f32 %v239_v19, %v239_v19  ;;  %v233_v24 = vld [vmem:[%s789_s4] sm:$0xff]  ;;  %v579_v27 = vpack.c.bf16 %v236_v15, %v235_v14  ;;  %v238_v34 = vld [vmem:[%s787_s6 + $0x18] sm:$0xff] }
   0x6   :  { %575 = vmatprep.subr.bf16.mxu1 %v608_v0  ;;  %v415_v22 = vmul.f32 %v240_v20, %v240_v20  ;;  %v446_v25 = vld [vmem:[%s790_s8] sm:$0xff]  ;;  %v389_v30 = vmul.f32 %v233_v24, %v233_v24  ;;  %v585_v32 = vpack.c.bf16 %v240_v20, %v239_v19  ;;  %v241_v36 = vld [vmem:[%s788_s7 + $0x10] sm:$0xff]  ;;  %v242_v37 = vld [vmem:[%s788_s7 + $0x18] sm:$0xff]  ;;  %v582_v39 = vpack.c.bf16 %v238_v34, %v237_v33 }
   0x7   :  { %v397_v23 = vadd.f32 %v394_v18, %v393_v17  ;;  %v720_v26 = vld [vmem:[%s791_s0] sm:$0xff]  ;;  %448 = vperm.xlu1 %594, %v446_v25   ;;  %v588_v41 = vpack.c.bf16 %v242_v37, %v241_v36  ;;  %v395_v42 = vmul.f32 %v237_v33, %v237_v33  ;;  %v396_v43 = vmul.f32 %v238_v34, %v238_v34 }
   0x8   :  { %571 = vmatpush3.bf16.msra.mxu0 %v570_v13  ;;  %v418_v28 = vadd.f32 %v415_v22, %v414_v21  ;;  %v234_v29 = vld [vmem:[%s792_s5] sm:$0xff]  ;;  %v390_v38 = vsel %vm49_vm1, %v389_v30, 0.0  ;;  %v416_v44 = vmul.f32 %v241_v36, %v241_v36  ;;  %v417_v46 = vmul.f32 %v242_v37, %v242_v37  ;;  %42 = vst.msk [vmem:[#allocation4] sm:$0xff] %vm38_vm2, %v610_v8 }
   0x9   :  { %577 = vmatpush3.bf16.msra.mxu1 %v576_v16  ;;  %v728_v31 = vld [vmem:[%s793_s1] sm:$0xff]  ;;  %578 = vmatprep.subr.bf16.mxu0 %v608_v0  ;;  %v410_v35 = vmul.f32 %v234_v29, %v234_v29  ;;  %v398_v45 = vadd.f32 %v397_v23, %v395_v42  ;;  %v201_v21 = vand.u32 127, %v200_v11 }
   0xa   :  { %584 = vmatprep.subr.bf16.mxu1 %v608_v0  ;;  %391 = vadd.xlane.f32.xlu0 %v390_v38  ;;  %v419_v48 = vadd.f32 %v418_v28, %v416_v44 }
   0xb   :  { %531 = vmatmul.mubr.msk.f32.vlgmr.msra.gmra.mrb[0].mxu0 %vm49_vm1, %v720_v26  ;;  %v411_v40 = vsel %vm49_vm1, %v410_v35, 0.0  ;;  %v399_v47 = vadd.f32 %v398_v45, %v396_v43  ;;  %vm205_vm3 = vcmp.lt.s32.totalorder %v201_v21, 12 }
   0xc   :  { %542 = vmatmul.mubr.msk.f32.vlgmr.msra.gmra.mrb[0].mxu1 %vm49_vm1, %v728_v31  ;;  %580 = vmatpush3.bf16.msra.mxu0 %v579_v27  ;;  %v420_v49 = vadd.f32 %v419_v48, %v417_v46  ;;  %v499_v27 = vsel %vm205_vm3, 1.0, %v610_v8 }
   0xd   :  { %586 = vmatpush3.bf16.msra.mxu1 %v585_v32  ;;  %581 = vmatprep.subr.bf16.mxu0 %v608_v0  ;;  %v400_v51 = vrot.slane %v399_v47, 4 }
   0xe   :  { %587 = vmatprep.subr.bf16.mxu1 %v608_v0  ;;  %552 = vmatprep.mubr.msk.f32.mxu0 %vm609_vm0, %v610_v8  ;;  %v421_v50 = vrot.slane %v420_v49, 4 }
   0xf   :  { %563 = vmatprep.mubr.msk.f32.mxu1 %vm609_vm0, %v610_v8  ;;  %412 = vadd.xlane.f32.xlu0 %v411_v40  ;;  %v401_v53 = vadd.f32 %v400_v51, %v399_v47  ;;  %v220_v51 = vld [vmem:[#allocation3] sm:$0xff] }
  0x10   :  { %583 = vmatpush3.bf16.msra.mxu0 %v582_v39  ;;  %v422_v52 = vadd.f32 %v421_v50, %v420_v49  ;;  %v470_v49 = vmul.f32 %v728_v31, %v720_v26 }
  0x11   :  { %589 = vmatpush3.bf16.msra.mxu1 %v588_v41  ;;  %v402_v55 = vrot.slane %v401_v53, 2 }
  0x12   :  { %v423_v54 = vrot.slane %v422_v52, 2  ;;  %v471_v50 = vsel %vm49_vm1, %v470_v49, 0.0 }
  0x13   :  { %553 = vmatmul.mubr.msk.f32.vlgmr.msra.gmra.mrb[2].mxu0 %vm49_vm1, %v233_v24  ;;  %v403_v57 = vadd.f32 %v402_v55, %v401_v53 }
  0x14   :  { %564 = vmatmul.mubr.msk.f32.vlgmr.msra.gmra.mrb[2].mxu1 %vm49_vm1, %v234_v29  ;;  %v424_v56 = vadd.f32 %v423_v54, %v422_v52  ;;  %v227_v52 = vld [vmem:[#allocation5] sm:$0xff] }
  0x15   :  { %v404_v0 = vrot.slane %v403_v57, 1 }
  0x16   :  { %v425_v60 = vrot.slane %v424_v56, 1 }
  0x17   :  { %v405_v7 = vadd.f32 %v404_v0, %v403_v57 }
  0x18   :  { %v426_v5 = vadd.f32 %v425_v60, %v424_v56  ;;  %v461_v60 = vld [vmem:[#allocation4] sm:$0xff] }
  0x86   :  { %v449_v39 = vpop.permute.xlu1 %448 }
  0x87   :  { %vm450_vm8 = vcmp.eq.s32.totalorder %v201_v21, %v449_v39 }
  0x97   :  { %v392_v58 = vpop.xlane.xlu0 %391 }
  0x98   :  { %v406_v14 = vadd.f32 %v405_v7, %v392_v58 }
  0x9c   :  { %v413_v9 = vpop.xlane.xlu0 %412 }
  0x9d   :  { %v427_v12 = vadd.f32 %v426_v5, %v413_v9 }
  0xde   :  { %v119_v59 = vpop.f32.mrb[0].mxu0 }
  0xdf   :  { %v208_v61 = vmul.f32 10.0, %v119_v59  ;;  %v196_v62 = vpop.f32.mrb[0].mxu1  ;;  %v532_v63 = vpop.f32.mrb[1].mxu0  ;;  %v455_v59 = vld [vmem:[#allocation2] sm:$0xff] }
  0xe0   :  { %v214_v1 = vmul.f32 10.0, %v196_v62  ;;  %v543_v2 = vpop.f32.mrb[1].mxu1 }
  0xe1   :  { %v209_v3 = vpack.c.bf16 %v208_v61, %v208_v61 }
  0xe2   :  { %v215_v4 = vpack.c.bf16 %v214_v1, %v214_v1 }
  0xe3   :  { %v211_v6 = vmul.bf16 1069105081, %v209_v3 }
  0xe4   :  { %v217_v10 = vmul.bf16 1069105081, %v215_v4 }
  0xe5   :  { %596 = vpow.bf16 %v211_v6 }
  0xe6   :  { %598 = vpow.bf16 %v217_v10  ;;  %v312_v13 = vpop.f32.mrb[2].mxu0 }
  0xe7   :  { %v407_v15 = vmul.f32 2.0, %v312_v13  ;;  %v385_v16 = vpop.f32.mrb[2].mxu1  ;;  %v554_v17 = vpop.f32.mrb[3].mxu0 }
  0xe8   :  { %v428_v18 = vmul.f32 2.0, %v385_v16  ;;  %v565_v19 = vpop.f32.mrb[3].mxu1 }
  0xe9   :  { %v408_v20 = vsub.f32 %v406_v14, %v407_v15 }
  0xea   :  { %v429_v22 = vsub.f32 %v427_v12, %v428_v18 }
  0xeb   :  { %v409_v23 = vmax.f32 %v408_v20, 0.0 }
  0xec   :  { %v430_v24 = vmax.f32 %v429_v22, 0.0 }
  0xed   :  { %600 = vrsqrt.f32 %v409_v23  ;;  %vm433_vm4 = vcmp.eq.f32.partialorder %v409_v23, inf  ;;  %v436_v37 = vand.u32 2147483648, %v409_v23  ;;  %vm435_vm5 = vcmp.eq.f32.partialorder %v409_v23, 0.0 }
  0xee   :  { %602 = vrsqrt.f32 %v430_v24  ;;  %vm440_vm6 = vcmp.eq.f32.partialorder %v430_v24, inf  ;;  %v443_v41 = vand.u32 2147483648, %v430_v24  ;;  %vm442_vm7 = vcmp.eq.f32.partialorder %v430_v24, 0.0 }
  0xf0   :  { %v597_v25 = vpop.eup %596 }
  0xf1   :  { %v599_v28 = vpop.eup %598  ;;  %v213_v29 = vunpack.c.l.bf16 %v597_v25 }
  0xf2   :  { %v219_v30 = vunpack.c.l.bf16 %v599_v28 }
  0xf3   :  { %v221_v32 = vmul.f32 %v499_v27, %v213_v29 }
  0xf4   :  { %v228_v33 = vmul.f32 %v499_v27, %v219_v30 }
  0xf5   :  { %222 = vadd.xlane.f32.xlu1 %v221_v32 }
  0xf6   :  { %229 = vadd.xlane.f32.xlu0 %v228_v33 }
  0xf7   :  { %v601_v34 = vpop.eup %600 }
  0xf8   :  { %v603_v35 = vpop.eup %602  ;;  %v432_v36 = vmul.f32 %v601_v34, %v409_v23 }
  0xf9   :  { %v439_v38 = vmul.f32 %v603_v35, %v430_v24 }
  0xfa   :  { %v434_v40 = vsel %vm433_vm4, %v409_v23, %v432_v36 }
  0xfb   :  { %v437_v42 = vsel %vm435_vm5, %v436_v37, %v434_v40  ;;  %v441_v43 = vsel %vm440_vm6, %v430_v24, %v439_v38 }
  0xfc   :  { %v444_v44 = vsel %vm442_vm7, %v443_v41, %v441_v43 }
  0xfd   :  { %v445_v45 = vadd.f32 %v444_v44, %v437_v42 }
  0xff   :  { %vm451_vm9 = vcmp.gt.f32.partialorder %v445_v45, 0.8 }
 0x100   :  { %vm452_vm10 = vmor %vm451_vm9, %vm450_vm8 }
 0x101   :  { %vm453_vm11 = vmand %vm452_vm10, %vm205_vm3 }
 0x102   :  { %v454_v46 = vsel %vm453_vm11, 1.0, %v610_v8 }
 0x103   :  { %v456_v47 = vmul.f32 %v454_v46, %v213_v29  ;;  %v462_v48 = vmul.f32 %v454_v46, %v219_v30 }
 0x105   :  { %457 = vadd.xlane.f32.xlu0 %v456_v47 }
 0x109   :  { %463 = vadd.xlane.f32.xlu0 %v462_v48 }
 0x10d   :  { %472 = vadd.xlane.f32.xlu0 %v471_v50 }
 0x182   :  { %v223_v53 = vpop.xlane.xlu1 %222 }
 0x183   :  { %v230_v54 = vpop.xlane.xlu0 %229  ;;  %v224_v55 = vadd.f32 %v223_v53, %v220_v51 }
 0x184   :  { %v231_v56 = vadd.f32 %v230_v54, %v227_v52 }
 0x185   :  { %226 = vst.msk [vmem:[#allocation3] sm:$0xff] %vm38_vm2, %v224_v55 }
 0x186   :  { %232 = vst.msk [vmem:[#allocation5] sm:$0xff] %vm38_vm2, %v231_v56 }
 0x18c   :  { %v475_v8 = vld [vmem:[#allocation3] sm:$0xff] }
 0x18d   :  { %v476_v57 = vld [vmem:[#allocation5] sm:$0xff] }
 0x18e   :  { %v477_v58 = vmul.f32 %v476_v57, %v475_v8 }
 0x190   :  { %604 = vlog2.f32 %v477_v58 }
 0x192   :  { %v458_v26 = vpop.xlane.xlu0 %457 }
 0x193   :  { %v459_v31 = vadd.f32 %v458_v26, %v455_v59 }
 0x195   :  { %460 = vst.msk [vmem:[#allocation2] sm:$0xff] %vm38_vm2, %v459_v31 }
 0x196   :  { %v464_v61 = vpop.xlane.xlu0 %463 }
 0x197   :  { %v465_v62 = vadd.f32 %v464_v61, %v461_v60 }
 0x199   :  { %466 = vst.msk [vmem:[#allocation4] sm:$0xff] %vm38_vm2, %v465_v62 }
 0x19a   :  { %v605_v63 = vpop.eup %604  ;;  %v473_v0 = vpop.xlane.xlu0 %472 }
 0x19b   :  { %v479_v1 = vmul.f32 0.6931472, %v605_v63  ;;  %v474_v2 = vmul.f32 -20.0, %v473_v0 }
 0x19c   :  { %v482_v4 = vld [vmem:[#allocation2] sm:$0xff] }
 0x19d   :  { %v480_v3 = vadd.f32 %v479_v1, %v474_v2 }
 0x19f   :  { %481 = vst.msk [vmem:[%s794_s10] sm:$0xff] %vm38_vm2, %v480_v3 }
 0x1a0   :  { %v483_v5 = vld [vmem:[#allocation4] sm:$0xff] }
 0x1a1   :  { %v484_v6 = vmul.f32 %v483_v5, %v482_v4 }
 0x1a3   :  { %606 = vlog2.f32 %v484_v6 }
 0x1ad   :  { %v607_v7 = vpop.eup %606 }
 0x1ae   :  { %v486_v9 = vmul.f32 0.6931472, %v607_v7 }
 0x1b0   :  { %v487_v10 = vadd.f32 %v486_v9, %v474_v2 }
 0x1b2   :  { %488 = vst.msk [vmem:[%s795_s9] sm:$0xff] %vm38_vm2, %v487_v10 }

// kernel: ci4gi_forward.13
= control target key start
LH: loop header
LB: loop body
LE: loop exit
PB: predicated region body
PF: predicated region fallthrough
CT: control target
= control target key end

     0   :  { %v289_v0 = vmov 0.0|0.0   ;;  %vm290_vm0 = vmmov 0   ;;  %v291_v8 = vmov 0.0   ;;  %vm30_vm1 = vcmask 261120   ;;  %s355_s2 = inlined_call_operand.vmem [shape: f32[32,128], index: 2, kind: input, shape index: {}]   ;;  %s356_s3 = inlined_call_operand.vmem [shape: f32[32,128], index: 3, kind: input, shape index: {}]   ;;  %s357_s0 = inlined_call_operand.vmem [shape: f32[8,32], index: 0, kind: input, shape index: {}]   ;;  %s358_s1 = inlined_call_operand.vmem [shape: f32[8,32], index: 1, kind: input, shape index: {}]   ;;  %s359_s4 = inlined_call_operand.vmem [shape: f32[8,1], index: 4, kind: output, shape index: {}]  }
   0x1   :  { %268 = vmatprep.subr.bf16.mxu0 %v289_v0  ;;  %v26_v1 = vld [vmem:[%s355_s2] sm:$0xff]  ;;  %v27_v2 = vld [vmem:[%s355_s2 + $0x8] sm:$0xff]  ;;  %274 = vmatprep.subr.bf16.mxu1 %v289_v0  ;;  %v28_v6 = vld [vmem:[%s355_s2 + $0x10] sm:$0xff]  ;;  %vm21_vm2 = vcmask 7168   ;;  %v181_v28 = vlaneseq }
   0x2   :  { %v104_v3 = vld [vmem:[%s356_s3] sm:$0xff]  ;;  %v269_v4 = vpack.c.bf16 %v27_v2, %v26_v1  ;;  %v105_v5 = vld [vmem:[%s356_s3 + $0x8] sm:$0xff]  ;;  %v29_v7 = vld [vmem:[%s355_s2 + $0x18] sm:$0xff]  ;;  %254 = vmatprep.mubr.msk.f32.mxu0 %vm290_vm0, %v291_v8  ;;  %265 = vmatprep.mubr.msk.f32.mxu1 %vm290_vm0, %v291_v8  ;;  %22 = vst.msk [vmem:[#allocation2] sm:$0xff] %vm21_vm2, %v291_v8 }
   0x3   :  { %v275_v9 = vpack.c.bf16 %v105_v5, %v104_v3  ;;  %v106_v10 = vld [vmem:[%s356_s3 + $0x10] sm:$0xff]  ;;  %v107_v11 = vld [vmem:[%s356_s3 + $0x18] sm:$0xff]  ;;  %v272_v12 = vpack.c.bf16 %v29_v7, %v28_v6  ;;  %v24_v14 = vld [vmem:[%s357_s0] sm:$0xff]  ;;  %23 = vst.msk [vmem:[#allocation3] sm:$0xff] %vm21_vm2, %v291_v8  ;;  %v182_v29 = vand.u32 127, %v181_v28 }
   0x4   :  { %270 = vmatpush3.bf16.msra.mxu0 %v269_v4  ;;  %v278_v13 = vpack.c.bf16 %v107_v11, %v106_v10  ;;  %v25_v15 = vld [vmem:[%s358_s1] sm:$0xff] }
   0x5   :  { %271 = vmatprep.subr.bf16.mxu0 %v289_v0  ;;  %276 = vmatpush3.bf16.msra.mxu1 %v275_v9  ;;  %v217_v16 = vmul.f32 %v25_v15, %v24_v14  ;;  %vm186_vm3 = vcmp.lt.s32.totalorder %v182_v29, 8 }
   0x6   :  { %277 = vmatprep.subr.bf16.mxu1 %v289_v0  ;;  %v235_v31 = vsel %vm186_vm3, 1.0, %v291_v8 }
   0x7   :  { %v218_v17 = vsel %vm30_vm1, %v217_v16, 0.0 }
   0x8   :  { %273 = vmatpush3.bf16.msra.mxu0 %v272_v12  ;;  %219 = vadd.xlane.f32.xlu1 %v218_v17 }
   0x9   :  { %279 = vmatpush3.bf16.msra.mxu1 %v278_v13  ;;  %v201_v37 = vld [vmem:[#allocation2] sm:$0xff] }
   0xa   :  { %v208_v40 = vld [vmem:[#allocation3] sm:$0xff] }
   0xb   :  { %255 = vmatmul.mubr.msk.f32.vlgmr.msra.gmra.mrb[0].mxu0 %vm30_vm1, %v24_v14 }
   0xc   :  { %266 = vmatmul.mubr.msk.f32.vlgmr.msra.gmra.mrb[0].mxu1 %vm30_vm1, %v25_v15 }
  0x95   :  { %v220_v46 = vpop.xlane.xlu1 %219 }
  0x96   :  { %v221_v47 = vmul.f32 -20.0, %v220_v46 }
  0xde   :  { %v100_v18 = vpop.f32.mrb[0].mxu0 }
  0xdf   :  { %v189_v19 = vmul.f32 10.0, %v100_v18  ;;  %v256_v20 = vpop.f32.mrb[1].mxu0  ;;  %v177_v21 = vpop.f32.mrb[0].mxu1 }
  0xe0   :  { %v195_v22 = vmul.f32 10.0, %v177_v21  ;;  %v267_v23 = vpop.f32.mrb[1].mxu1 }
  0xe1   :  { %v190_v24 = vpack.c.bf16 %v189_v19, %v189_v19 }
  0xe2   :  { %v196_v25 = vpack.c.bf16 %v195_v22, %v195_v22 }
  0xe3   :  { %v192_v26 = vmul.bf16 1069105081, %v190_v24 }
  0xe4   :  { %v198_v27 = vmul.bf16 1069105081, %v196_v25 }
  0xe5   :  { %283 = vpow.bf16 %v192_v26 }
  0xe6   :  { %285 = vpow.bf16 %v198_v27 }
  0xf0   :  { %v284_v30 = vpop.eup %283 }
  0xf1   :  { %v286_v32 = vpop.eup %285  ;;  %v194_v33 = vunpack.c.l.bf16 %v284_v30 }
  0xf2   :  { %v200_v34 = vunpack.c.l.bf16 %v286_v32 }
  0xf3   :  { %v202_v35 = vmul.f32 %v235_v31, %v194_v33 }
  0xf4   :  { %v209_v36 = vmul.f32 %v235_v31, %v200_v34 }
  0xf5   :  { %203 = vadd.xlane.f32.xlu0 %v202_v35 }
  0xf9   :  { %210 = vadd.xlane.f32.xlu0 %v209_v36 }
 0x182   :  { %v204_v38 = vpop.xlane.xlu0 %203 }
 0x183   :  { %v205_v39 = vadd.f32 %v204_v38, %v201_v37 }
 0x185   :  { %207 = vst.msk [vmem:[#allocation2] sm:$0xff] %vm21_vm2, %v205_v39 }
 0x186   :  { %v211_v41 = vpop.xlane.xlu0 %210 }
 0x187   :  { %v212_v42 = vadd.f32 %v211_v41, %v208_v40 }
 0x189   :  { %213 = vst.msk [vmem:[#allocation3] sm:$0xff] %vm21_vm2, %v212_v42 }
 0x18c   :  { %v222_v43 = vld [vmem:[#allocation2] sm:$0xff] }
 0x190   :  { %v223_v44 = vld [vmem:[#allocation3] sm:$0xff] }
 0x191   :  { %v224_v45 = vmul.f32 %v223_v44, %v222_v43 }
 0x193   :  { %287 = vlog2.f32 %v224_v45 }
 0x19d   :  { %v288_v48 = vpop.eup %287 }
 0x19e   :  { %v226_v49 = vmul.f32 0.6931472, %v288_v48 }
 0x1a0   :  { %v227_v50 = vadd.f32 %v226_v49, %v221_v47 }
 0x1a2   :  { %228 = vst.msk [vmem:[%s359_s4] sm:$0xff] %vm21_vm2, %v227_v50 }

</bundles_post_ra>
